<compile_context>
chip_gen: v7x
topology: tpu7x:2x2x1
jax: 0.10.0
libtpu: 0.0.40
codegen_flags: <defaults>
</compile_context>

<pallas_src>
import functools

import jax
import jax.numpy as jnp
from jax.experimental import pallas as pl
from jax.experimental.pallas import tpu as pltpu

# Set to jnp.bfloat16 on v6e/v7x to hit full MXU throughput (accumulation stays
# f32 either way). Default f32 preserves the reference numerics exactly.
_MXU_DTYPE = jnp.float32

_PAR1 = pltpu.CompilerParams(dimension_semantics=("parallel",))


def _row_block(m, target=256):
    """Largest row tile <= target that evenly divides m (full m when small)."""
    if m <= target:
        return m
    for bm in range(target, 0, -8):
        if m % bm == 0:
            return bm
    return m


# ----------------------------------------------------------------------------
# Pallas kernels
# ----------------------------------------------------------------------------

def _linear_kernel(x_ref, w_ref, b_ref, o_ref):
    """y = x @ W + b with f32 MXU accumulation."""
    y = jnp.dot(x_ref[...].astype(_MXU_DTYPE), w_ref[...].astype(_MXU_DTYPE),
                preferred_element_type=jnp.float32)
    o_ref[...] = (y + b_ref[...]).astype(o_ref.dtype)


def linear(x, w, b):
    """x: (..., din) @ w: (din, dout) + b: (1, dout). Row-tiled."""
    # TODO(synk): for large dout on v7x (64 MiB VMEM) the weight should be
    # N-tiled (e.g. TN=512) instead of loaded whole; unnecessary at these sizes.
    din, dout = w.shape
    lead = x.shape[:-1]
    x2 = x.reshape(-1, din)
    m = x2.shape[0]
    bm = _row_block(m)
    out = pl.pallas_call(
        _linear_kernel,
        out_shape=jax.ShapeDtypeStruct((m, dout), x.dtype),
        grid=(m // bm,),
        in_specs=[
            pl.BlockSpec((bm, din), lambda i: (i, 0)),
            pl.BlockSpec((din, dout), lambda i: (0, 0)),   # constant index -> fetched once
            pl.BlockSpec((1, dout), lambda i: (0, 0)),
        ],
        out_specs=pl.BlockSpec((bm, dout), lambda i: (i, 0)),
        compiler_params=_PAR1,
    )(x2, w, b)
    return out.reshape(lead + (dout,))


def _ln_residual_kernel(x_ref, r_ref, g_ref, b_ref, o_ref):
    """LayerNorm(x + res) — residual add fused into the LN kernel."""
    x = x_ref[...].astype(jnp.float32) + r_ref[...].astype(jnp.float32)
    mean = jnp.mean(x, axis=-1, keepdims=True)
    var = jnp.mean((x - mean) ** 2, axis=-1, keepdims=True)
    y = (x - mean) * jax.lax.rsqrt(var + 1e-5)
    o_ref[...] = (y * g_ref[...] + b_ref[...]).astype(o_ref.dtype)


def layernorm_residual(x, res, gamma, beta):
    """LayerNorm(x + res), eps=1e-5 (matches nn.LayerNorm)."""
    d = x.shape[-1]
    lead = x.shape[:-1]
    x2 = x.reshape(-1, d)
    r2 = res.reshape(-1, d)
    m = x2.shape[0]
    bm = _row_block(m)
    out = pl.pallas_call(
        _ln_residual_kernel,
        out_shape=jax.ShapeDtypeStruct((m, d), x.dtype),
        grid=(m // bm,),
        in_specs=[
            pl.BlockSpec((bm, d), lambda i: (i, 0)),
            pl.BlockSpec((bm, d), lambda i: (i, 0)),
            pl.BlockSpec((1, d), lambda i: (0, 0)),
            pl.BlockSpec((1, d), lambda i: (0, 0)),
        ],
        out_specs=pl.BlockSpec((bm, d), lambda i: (i, 0)),
        compiler_params=_PAR1,
    )(x2, r2, gamma, beta)
    return out.reshape(lead + (d,))


def _ffn_ln_kernel(x_ref, w1_ref, b1_ref, w2_ref, b2_ref, g_ref, b_ref, o_ref):
    """LayerNorm(ReLU(x@W1+b1)@W2 + b2 + x) — whole FFN + residual + LN fused."""
    x = x_ref[...].astype(jnp.float32)
    h = jnp.dot(x.astype(_MXU_DTYPE), w1_ref[...].astype(_MXU_DTYPE),
                preferred_element_type=jnp.float32) + b1_ref[...]
    h = jnp.maximum(h, 0.0)
    y = jnp.dot(h.astype(_MXU_DTYPE), w2_ref[...].astype(_MXU_DTYPE),
                preferred_element_type=jnp.float32) + b2_ref[...]
    y = y + x                                     # residual
    mean = jnp.mean(y, axis=-1, keepdims=True)
    var = jnp.mean((y - mean) ** 2, axis=-1, keepdims=True)
    z = (y - mean) * jax.lax.rsqrt(var + 1e-5)
    o_ref[...] = (z * g_ref[...] + b_ref[...]).astype(o_ref.dtype)


def ffn_residual_ln(x, w1, b1, w2, b2, gamma, beta):
    d = x.shape[-1]
    dh = w1.shape[1]
    lead = x.shape[:-1]
    x2 = x.reshape(-1, d)
    m = x2.shape[0]
    bm = _row_block(m)
    out = pl.pallas_call(
        _ffn_ln_kernel,
        out_shape=jax.ShapeDtypeStruct((m, d), x.dtype),
        grid=(m // bm,),
        in_specs=[
            pl.BlockSpec((bm, d), lambda i: (i, 0)),
            pl.BlockSpec((d, dh), lambda i: (0, 0)),
            pl.BlockSpec((1, dh), lambda i: (0, 0)),
            pl.BlockSpec((dh, d), lambda i: (0, 0)),
            pl.BlockSpec((1, d), lambda i: (0, 0)),
            pl.BlockSpec((1, d), lambda i: (0, 0)),
            pl.BlockSpec((1, d), lambda i: (0, 0)),
        ],
        out_specs=pl.BlockSpec((bm, d), lambda i: (i, 0)),
        compiler_params=_PAR1,
    )(x2, w1, b1, w2, b2, gamma, beta)
    return out.reshape(lead + (d,))


def _attention_kernel(xq_ref, xkv_ref, wqr_ref, bqr_ref, wkv_ref, bkv_ref,
                      wo_ref, bo_ref, bias_ref, o_ref, *, n_heads, inv_scale):
    """Fully fused SelfAttention for one batch element (all heads).

    projections -> per-head (QK^T + mask_bias)/scale -> softmax -> (attn@V)*R
    -> fc_out, all in VMEM; activations keep the [S, D] layout.
    """
    f32 = jnp.float32
    xq = xq_ref[...].astype(f32)          # (Sq, D)  query stream
    xkv = xkv_ref[...].astype(f32)        # (Sk, D)  key/value stream
    bias = bias_ref[...]                  # (Sq, Sk) additive: 0 keep / -1e20 masked
    sq, d = xq.shape
    hd = d // n_heads

    # Fused lane-dense projections: Q|R from query stream, K|V from key/value stream.
    qr = jnp.dot(xq.astype(_MXU_DTYPE), wqr_ref[...].astype(_MXU_DTYPE),
                 preferred_element_type=f32) + bqr_ref[...]        # (Sq, 2D)
    kv = jnp.dot(xkv.astype(_MXU_DTYPE), wkv_ref[...].astype(_MXU_DTYPE),
                 preferred_element_type=f32) + bkv_ref[...]        # (Sk, 2D)
    q, r = qr[:, :d], qr[:, d:]
    k, v = kv[:, :d], kv[:, d:]

    qm = q.astype(_MXU_DTYPE)
    km = k.astype(_MXU_DTYPE)
    vm = v.astype(_MXU_DTYPE)
    wo = wo_ref[...].astype(_MXU_DTYPE)   # (D, D)

    dn = (((1,), (1,)), ((), ()))         # contract last dims: q @ k^T w/o transpose
    acc = jnp.zeros((sq, d), f32)
    for h in range(n_heads):              # static unroll over heads (all in VMEM)
        sl = slice(h * hd, (h + 1) * hd)
        energy = jax.lax.dot_general(qm[:, sl], km[:, sl], dn,
                                     preferred_element_type=f32)   # (Sq, Sk)
        # reference ordering: mask fill, then divide by scale, then softmax
        energy = (energy + bias) * inv_scale
        mx = jnp.max(energy, axis=-1, keepdims=True)
        p = jnp.exp(energy - mx)
        attn = p * pl.reciprocal(jnp.sum(p, axis=-1, keepdims=True), approx=True)
        ctx = jnp.dot(attn.astype(_MXU_DTYPE), vm[:, sl],
                      preferred_element_type=f32)                  # (Sq, hd)
        # TP-style R binding folded into fc_out:
        #   concat_h(ctx_h * r_h) @ Wo == sum_h (ctx_h * r_h) @ Wo[h*hd:(h+1)*hd]
        acc = acc + jnp.dot((ctx * r[:, sl]).astype(_MXU_DTYPE), wo[sl, :],
                            preferred_element_type=f32)
    o_ref[...] = (acc + bo_ref[...]).astype(o_ref.dtype)


def self_attention(p, value, key, query, bias, *, n_heads, inv_scale):
    # TODO(synk): the reference uses undefined attrs (num_heads, embedding.q_dim,
    # p.v_dim) and permutes the un-projected `key`; implemented as the evident
    # intent: Q=Wq(query), K=Wk(key), V=Wv(value), R=Wr(query).
    # In every call path of this model `key is value`, so K|V share one fused
    # projection of the key/value stream.
    del value  # identical tensor to `key` in all call paths
    b, sq, d = query.shape
    sk = key.shape[1]
    kern = functools.partial(_attention_kernel, n_heads=n_heads, inv_scale=inv_scale)
    return pl.pallas_call(
        kern,
        out_shape=jax.ShapeDtypeStruct((b, sq, d), query.dtype),
        grid=(b,),
        in_specs=[
            pl.BlockSpec((None, sq, d), lambda i: (i, 0, 0)),    # query stream
            pl.BlockSpec((None, sk, d), lambda i: (i, 0, 0)),    # key/value stream
            pl.BlockSpec((d, 2 * d), lambda i: (0, 0)),          # [Wq | Wr]
            pl.BlockSpec((1, 2 * d), lambda i: (0, 0)),
            pl.BlockSpec((d, 2 * d), lambda i: (0, 0)),          # [Wk | Wv]
            pl.BlockSpec((1, 2 * d), lambda i: (0, 0)),
            pl.BlockSpec((d, d), lambda i: (0, 0)),              # Wo
            pl.BlockSpec((1, d), lambda i: (0, 0)),
            pl.BlockSpec((None, sq, sk), lambda i: (i, 0, 0)),   # additive mask bias
        ],
        out_specs=pl.BlockSpec((None, sq, d), lambda i: (i, 0, 0)),
        compiler_params=_PAR1,
    )(query, key, p["qr_w"], p["qr_b"], p["kv_w"], p["kv_b"],
      p["o_w"], p["o_b"], bias)


# ----------------------------------------------------------------------------
# Module forward passes (glue around the kernels)
# ----------------------------------------------------------------------------

def transformer_block(p, kv, query, bias, *, n_heads, inv_scale):
    att = self_attention(p["att"], kv, kv, query, bias,
                         n_heads=n_heads, inv_scale=inv_scale)
    x = layernorm_residual(att, query, p["n1_g"], p["n1_b"])
    # TODO(synk): reference's 2nd FF layer is Linear(D, 4D) which cannot accept
    # a 4D-wide input; implemented as the intended Linear(4D, D).
    return ffn_residual_ln(x, p["ff1_w"], p["ff1_b"], p["ff2_w"], p["ff2_b"],
                           p["n2_g"], p["n2_b"])
    # dropout(p=0 / eval) is the identity -> omitted


def decoder_block(p, x, enc_out, src_bias, trg_bias, *, n_heads, inv_scale):
    att = self_attention(p["self_att"], x, x, x, trg_bias,
                         n_heads=n_heads, inv_scale=inv_scale)
    out = layernorm_residual(att, x, p["n1_g"], p["n1_b"])
    return transformer_block(p["tb"], enc_out, out, src_bias,
                             n_heads=n_heads, inv_scale=inv_scale)


def make_attn_bias(mask, n, sq, sk):
    """(N,1,sq|1,sk) mask (nonzero = attend) -> (N,sq,sk) additive f32 bias."""
    m = mask.reshape(n, mask.shape[-2], mask.shape[-1]) != 0
    m = jnp.broadcast_to(m, (n, sq, sk))
    return jnp.where(m, 0.0, -1e20).astype(jnp.float32)


def decoder_forward(params, tokens, enc_out, src_mask, trg_mask,
                    *, n_heads, scale, vocab):
    n, s = tokens.shape
    s_enc = enc_out.shape[1]
    emb = jnp.take(params["tok_emb"], tokens, axis=0)            # (N, S, D)
    # TODO(synk): reference adds raw integer positions to the embedding (shape
    # mismatch); positional_embedding(pos) is used as intended.
    x = emb + jnp.take(params["pos_emb"], jnp.arange(s), axis=0)[None, :, :]

    inv_scale = 1.0 / scale
    # Additive mask biases are built ONCE and shared by all blocks / heads.
    trg_bias = make_attn_bias(trg_mask, n, s, s)
    src_bias = make_attn_bias(src_mask, n, s, s_enc)

    out = x
    for blk in params["blocks"]:
        # TODO(synk): reference feeds raw token ids into each block, applies
        # self.linear inside the loop and returns None; the carried hidden
        # state is used and the vocab projection + return are applied once.
        out = decoder_block(blk, out, enc_out, src_bias, trg_bias,
                            n_heads=n_heads, inv_scale=inv_scale)
    # Vocab projection: weights are zero-padded to a lane-dense multiple of 128
    # inside init_decoder; slice the padded logits back here (outside the kernel).
    logits = linear(out, params["lin_w"], params["lin_b"])
    return logits[..., :vocab]


# ----------------------------------------------------------------------------
# Deterministic parameter init
# ----------------------------------------------------------------------------

def _init_linear(key, din, dout):
    kw, kb = jax.random.split(key)
    return (jax.random.normal(kw, (din, dout), jnp.float32) * 0.02,
            jax.random.normal(kb, (1, dout), jnp.float32) * 0.02)


def _init_attention(key, d):
    kq, kr, kk, kv, ko = jax.random.split(key, 5)
    qw, qb = _init_linear(kq, d, d)
    rw, rb = _init_linear(kr, d, d)
    kw_, kb_ = _init_linear(kk, d, d)
    vw, vb = _init_linear(kv, d, d)
    ow, ob = _init_linear(ko, d, d)
    # Fused projection weights: [Wq|Wr] on the query stream, [Wk|Wv] on the
    # key/value stream (lane-dense 2D-wide outputs, one matmul each).
    return dict(
        qr_w=jnp.concatenate([qw, rw], axis=1),
        qr_b=jnp.concatenate([qb, rb], axis=1),
        kv_w=jnp.concatenate([kw_, vw], axis=1),
        kv_b=jnp.concatenate([kb_, vb], axis=1),
        o_w=ow, o_b=ob)


def _init_transformer_block(key, d):
    k1, k2, k3 = jax.random.split(key, 3)
    ff1_w, ff1_b = _init_linear(k2, d, 4 * d)
    ff2_w, ff2_b = _init_linear(k3, 4 * d, d)
    return dict(
        att=_init_attention(k1, d),
        n1_g=jnp.ones((1, d), jnp.float32), n1_b=jnp.zeros((1, d), jnp.float32),
        n2_g=jnp.ones((1, d), jnp.float32), n2_b=jnp.zeros((1, d), jnp.float32),
        ff1_w=ff1_w, ff1_b=ff1_b, ff2_w=ff2_w, ff2_b=ff2_b)


def _init_decoder_block(key, d):
    k1, k2 = jax.random.split(key)
    return dict(
        self_att=_init_attention(k1, d),
        n1_g=jnp.ones((1, d), jnp.float32), n1_b=jnp.zeros((1, d), jnp.float32),
        tb=_init_transformer_block(k2, d))


def init_decoder(key, vocab, d, n_blocks, max_len):
    k_tok, k_pos, k_lin, k_blocks = jax.random.split(key, 4)
    lin_w, lin_b = _init_linear(k_lin, d, vocab)
    vpad = 128 * pl.cdiv(vocab, 128)          # lane-dense vocab projection
    lin_w = jnp.pad(lin_w, ((0, 0), (0, vpad - vocab)))
    lin_b = jnp.pad(lin_b, ((0, 0), (0, vpad - vocab)))
    return dict(
        tok_emb=jax.random.normal(k_tok, (vocab, d), jnp.float32) * 0.02,
        pos_emb=jax.random.normal(k_pos, (max_len, d), jnp.float32) * 0.02,
        blocks=[_init_decoder_block(kb, d)
                for kb in jax.random.split(k_blocks, n_blocks)],
        lin_w=lin_w, lin_b=lin_b)


# ----------------------------------------------------------------------------
# Demo
# ----------------------------------------------------------------------------

if __name__ == "__main__":
    VOCAB, EMB, HEADS, N_BLOCKS, MAX_LEN = 50, 32, 4, 2, 16
    N, S_DEC, S_ENC = 2, 8, 8
    # Faithful to reference: scale = embedding_dim ** 1 / 2  ==  embedding_dim / 2
    SCALE = EMB ** 1 / 2

    root = jax.random.PRNGKey(0)
    k_par, k_tok, k_enc = jax.random.split(root, 3)

    params = init_decoder(k_par, VOCAB, EMB, N_BLOCKS, MAX_LEN)
    tokens = jax.random.randint(k_tok, (N, S_DEC), 0, VOCAB, dtype=jnp.int32)
    enc_out = jax.random.normal(k_enc, (N, S_ENC, EMB), jnp.float32)

    # Boolean masks (exact), converted once to additive biases in the forward.
    trg_mask = jnp.broadcast_to(
        jnp.tril(jnp.ones((S_DEC, S_DEC), jnp.bool_))[None, None],
        (N, 1, S_DEC, S_DEC))
    src_mask = jnp.ones((N, 1, 1, S_ENC), jnp.bool_)

    fwd = jax.jit(functools.partial(decoder_forward, n_heads=HEADS,
                                    scale=SCALE, vocab=VOCAB))
    logits = fwd(params, tokens, enc_out, src_mask, trg_mask)
    jax.block_until_ready(logits)
    assert logits.shape == (N, S_DEC, VOCAB)
    print("KERNEL_OK")
</pallas_src>

<mosaic_0001>
module attributes {stable_mosaic.version = 11 : i64} {
  func.func @_ln_residual_kernel(%arg0: i32, %arg1: memref<16x32xf32, #tpu.memory_space<vmem>>, %arg2: memref<16x32xf32, #tpu.memory_space<vmem>>, %arg3: memref<1x32xf32, #tpu.memory_space<vmem>>, %arg4: memref<1x32xf32, #tpu.memory_space<vmem>>, %arg5: memref<16x32xf32, #tpu.memory_space<vmem>>) attributes {dimension_semantics = [#tpu.dimension_semantics<parallel>], iteration_bounds = array<i64: 1>, scalar_prefetch = 0 : i64, scratch_operands = 0 : i64, tpu.core_type = #tpu.core_type<tc>, window_params = [{transform_indices = @transform_0, window_bounds = array<i64: 16, 32>}, {transform_indices = @transform_1, window_bounds = array<i64: 16, 32>}, {pipeline_mode = #tpu.pipeline_mode<synchronous>, transform_indices = @transform_2, window_bounds = array<i64: 1, 32>}, {pipeline_mode = #tpu.pipeline_mode<synchronous>, transform_indices = @transform_3, window_bounds = array<i64: 1, 32>}, {transform_indices = @transform_4, window_bounds = array<i64: 16, 32>}]} {
    %c0 = arith.constant 0 : index
    %c0_0 = arith.constant 0 : index
    %0 = vector.load %arg1[%c0, %c0_0] : memref<16x32xf32, #tpu.memory_space<vmem>>, vector<16x32xf32>
    %c0_1 = arith.constant 0 : index
    %c0_2 = arith.constant 0 : index
    %1 = vector.load %arg2[%c0_1, %c0_2] : memref<16x32xf32, #tpu.memory_space<vmem>>, vector<16x32xf32>
    %2 = arith.addf %0, %1 : vector<16x32xf32>
    %cst = arith.constant dense<0.000000e+00> : vector<16xf32>
    %3 = vector.multi_reduction <add>, %2, %cst [1] : vector<16x32xf32> to vector<16xf32>
    %4 = vector.shape_cast %3 : vector<16xf32> to vector<16x1xf32>
    %cst_3 = arith.constant 3.200000e+01 : f32
    %5 = vector.broadcast %cst_3 : f32 to vector<16x1xf32>
    %6 = arith.divf %4, %5 : vector<16x1xf32>
    %7 = vector.broadcast %6 : vector<16x1xf32> to vector<16x32xf32>
    %8 = arith.subf %2, %7 : vector<16x32xf32>
    %9 = arith.mulf %8, %8 : vector<16x32xf32>
    %cst_4 = arith.constant dense<0.000000e+00> : vector<16xf32>
    %10 = vector.multi_reduction <add>, %9, %cst_4 [1] : vector<16x32xf32> to vector<16xf32>
    %11 = vector.shape_cast %10 : vector<16xf32> to vector<16x1xf32>
    %cst_5 = arith.constant 3.200000e+01 : f32
    %12 = vector.broadcast %cst_5 : f32 to vector<16x1xf32>
    %13 = arith.divf %11, %12 : vector<16x1xf32>
    %14 = vector.broadcast %6 : vector<16x1xf32> to vector<16x32xf32>
    %15 = arith.subf %2, %14 : vector<16x32xf32>
    %cst_6 = arith.constant 9.99999974E-6 : f32
    %16 = vector.broadcast %cst_6 : f32 to vector<16x1xf32>
    %17 = arith.addf %13, %16 : vector<16x1xf32>
    %18 = math.rsqrt %17 : vector<16x1xf32>
    %19 = vector.broadcast %18 : vector<16x1xf32> to vector<16x32xf32>
    %20 = arith.mulf %15, %19 : vector<16x32xf32>
    %c0_7 = arith.constant 0 : index
    %c0_8 = arith.constant 0 : index
    %21 = vector.load %arg3[%c0_7, %c0_8] : memref<1x32xf32, #tpu.memory_space<vmem>>, vector<1x32xf32>
    %22 = vector.broadcast %21 : vector<1x32xf32> to vector<16x32xf32>
    %23 = arith.mulf %20, %22 : vector<16x32xf32>
    %c0_9 = arith.constant 0 : index
    %c0_10 = arith.constant 0 : index
    %24 = vector.load %arg4[%c0_9, %c0_10] : memref<1x32xf32, #tpu.memory_space<vmem>>, vector<1x32xf32>
    %25 = vector.broadcast %24 : vector<1x32xf32> to vector<16x32xf32>
    %26 = arith.addf %23, %25 : vector<16x32xf32>
    %c0_11 = arith.constant 0 : index
    %c0_12 = arith.constant 0 : index
    %27 = vector.load %arg5[%c0_11, %c0_12] : memref<16x32xf32, #tpu.memory_space<vmem>>, vector<16x32xf32>
    tpu.vector_store %arg5[%c0_11, %c0_12], %26 {strides = array<i32>} : memref<16x32xf32, #tpu.memory_space<vmem>>, vector<16x32xf32>,
    return
  }
  func.func @transform_0(%arg0: i32) -> (i32, i32) {
    %c0_i32 = arith.constant 0 : i32
    %c0_i32_0 = arith.constant 0 : i32
    return %arg0, %c0_i32 : i32, i32
  }
  func.func @transform_1(%arg0: i32) -> (i32, i32) {
    %c0_i32 = arith.constant 0 : i32
    %c0_i32_0 = arith.constant 0 : i32
    return %arg0, %c0_i32 : i32, i32
  }
  func.func @transform_2(%arg0: i32) -> (i32, i32) {
    %c0_i32 = arith.constant 0 : i32
    %c0_i32_0 = arith.constant 0 : i32
    %c0_i32_1 = arith.constant 0 : i32
    return %c0_i32, %c0_i32_0 : i32, i32
  }
  func.func @transform_3(%arg0: i32) -> (i32, i32) {
    %c0_i32 = arith.constant 0 : i32
    %c0_i32_0 = arith.constant 0 : i32
    %c0_i32_1 = arith.constant 0 : i32
    return %c0_i32, %c0_i32_0 : i32, i32
  }
  func.func @transform_4(%arg0: i32) -> (i32, i32) {
    %c0_i32 = arith.constant 0 : i32
    %c0_i32_0 = arith.constant 0 : i32
    return %arg0, %c0_i32 : i32, i32
  }
}

module attributes {stable_mosaic.version = 11 : i64} {
  func.func @_attention_kernel(%arg0: i32, %arg1: memref<1x8x32xf32, #tpu.memory_space<vmem>>, %arg2: memref<1x8x32xf32, #tpu.memory_space<vmem>>, %arg3: memref<32x64xf32, #tpu.memory_space<vmem>>, %arg4: memref<1x64xf32, #tpu.memory_space<vmem>>, %arg5: memref<32x64xf32, #tpu.memory_space<vmem>>, %arg6: memref<1x64xf32, #tpu.memory_space<vmem>>, %arg7: memref<32x32xf32, #tpu.memory_space<vmem>>, %arg8: memref<1x32xf32, #tpu.memory_space<vmem>>, %arg9: memref<1x8x8xf32, #tpu.memory_space<vmem>>, %arg10: memref<1x8x32xf32, #tpu.memory_space<vmem>>) attributes {dimension_semantics = [#tpu.dimension_semantics<parallel>], iteration_bounds = array<i64: 2>, scalar_prefetch = 0 : i64, scratch_operands = 0 : i64, tpu.core_type = #tpu.core_type<tc>, window_params = [{transform_indices = @transform_0, window_bounds = array<i64: 1, 8, 32>}, {transform_indices = @transform_1, window_bounds = array<i64: 1, 8, 32>}, {pipeline_mode = #tpu.pipeline_mode<synchronous>, transform_indices = @transform_2, window_bounds = array<i64: 32, 64>}, {pipeline_mode = #tpu.pipeline_mode<synchronous>, transform_indices = @transform_3, window_bounds = array<i64: 1, 64>}, {pipeline_mode = #tpu.pipeline_mode<synchronous>, transform_indices = @transform_4, window_bounds = array<i64: 32, 64>}, {pipeline_mode = #tpu.pipeline_mode<synchronous>, transform_indices = @transform_5, window_bounds = array<i64: 1, 64>}, {pipeline_mode = #tpu.pipeline_mode<synchronous>, transform_indices = @transform_6, window_bounds = array<i64: 32, 32>}, {pipeline_mode = #tpu.pipeline_mode<synchronous>, transform_indices = @transform_7, window_bounds = array<i64: 1, 32>}, {transform_indices = @transform_8, window_bounds = array<i64: 1, 8, 8>}, {transform_indices = @transform_9, window_bounds = array<i64: 1, 8, 32>}]} {
    %c0 = arith.constant 0 : index
    %c0_0 = arith.constant 0 : index
    %c0_1 = arith.constant 0 : index
    %0 = vector.load %arg1[%c0, %c0_0, %c0_1] : memref<1x8x32xf32, #tpu.memory_space<vmem>>, vector<1x8x32xf32>
    %1 = vector.shape_cast %0 : vector<1x8x32xf32> to vector<8x32xf32>
    %c0_2 = arith.constant 0 : index
    %c0_3 = arith.constant 0 : index
    %c0_4 = arith.constant 0 : index
    %2 = vector.load %arg2[%c0_2, %c0_3, %c0_4] : memref<1x8x32xf32, #tpu.memory_space<vmem>>, vector<1x8x32xf32>
    %3 = vector.shape_cast %2 : vector<1x8x32xf32> to vector<8x32xf32>
    %c0_5 = arith.constant 0 : index
    %c0_6 = arith.constant 0 : index
    %c0_7 = arith.constant 0 : index
    %4 = vector.load %arg9[%c0_5, %c0_6, %c0_7] : memref<1x8x8xf32, #tpu.memory_space<vmem>>, vector<1x8x8xf32>
    %5 = vector.shape_cast %4 : vector<1x8x8xf32> to vector<8x8xf32>
    %c0_8 = arith.constant 0 : index
    %c0_9 = arith.constant 0 : index
    %6 = vector.load %arg3[%c0_8, %c0_9] : memref<32x64xf32, #tpu.memory_space<vmem>>, vector<32x64xf32>
    %cst = arith.constant dense<0.000000e+00> : vector<8x64xf32>
    %7 = tpu.matmul %1, %6, %cst {dimension_numbers = #tpu.dot_dimension_numbers<[1], [0], [0], [1], [0, 0, 1, 1], [], []>} : vector<8x32xf32>, vector<32x64xf32>, vector<8x64xf32> -> vector<8x64xf32>
    %c0_10 = arith.constant 0 : index
    %c0_11 = arith.constant 0 : index
    %8 = vector.load %arg4[%c0_10, %c0_11] : memref<1x64xf32, #tpu.memory_space<vmem>>, vector<1x64xf32>
    %9 = vector.broadcast %8 : vector<1x64xf32> to vector<8x64xf32>
    %10 = arith.addf %7, %9 : vector<8x64xf32>
    %c0_12 = arith.constant 0 : index
    %c0_13 = arith.constant 0 : index
    %11 = vector.load %arg5[%c0_12, %c0_13] : memref<32x64xf32, #tpu.memory_space<vmem>>, vector<32x64xf32>
    %cst_14 = arith.constant dense<0.000000e+00> : vector<8x64xf32>
    %12 = tpu.matmul %3, %11, %cst_14 {dimension_numbers = #tpu.dot_dimension_numbers<[1], [0], [0], [1], [0, 0, 1, 1], [], []>} : vector<8x32xf32>, vector<32x64xf32>, vector<8x64xf32> -> vector<8x64xf32>
    %c0_15 = arith.constant 0 : index
    %c0_16 = arith.constant 0 : index
    %13 = vector.load %arg6[%c0_15, %c0_16] : memref<1x64xf32, #tpu.memory_space<vmem>>, vector<1x64xf32>
    %14 = vector.broadcast %13 : vector<1x64xf32> to vector<8x64xf32>
    %15 = arith.addf %12, %14 : vector<8x64xf32>
    %16 = vector.extract_strided_slice %10 {offsets = [0, 0], sizes = [8, 32], strides = [1, 1]} : vector<8x64xf32> to vector<8x32xf32>
    %17 = vector.extract_strided_slice %10 {offsets = [0, 32], sizes = [8, 32], strides = [1, 1]} : vector<8x64xf32> to vector<8x32xf32>
    %18 = vector.extract_strided_slice %15 {offsets = [0, 0], sizes = [8, 32], strides = [1, 1]} : vector<8x64xf32> to vector<8x32xf32>
    %19 = vector.extract_strided_slice %15 {offsets = [0, 32], sizes = [8, 32], strides = [1, 1]} : vector<8x64xf32> to vector<8x32xf32>
    %c0_17 = arith.constant 0 : index
    %c0_18 = arith.constant 0 : index
    %20 = vector.load %arg7[%c0_17, %c0_18] : memref<32x32xf32, #tpu.memory_space<vmem>>, vector<32x32xf32>
    %cst_19 = arith.constant 0.000000e+00 : f32
    %21 = vector.broadcast %cst_19 : f32 to vector<8x32xf32>
    %22 = vector.extract_strided_slice %16 {offsets = [0, 0], sizes = [8, 8], strides = [1, 1]} : vector<8x32xf32> to vector<8x8xf32>
    %23 = vector.extract_strided_slice %18 {offsets = [0, 0], sizes = [8, 8], strides = [1, 1]} : vector<8x32xf32> to vector<8x8xf32>
    %cst_20 = arith.constant dense<0.000000e+00> : vector<8x8xf32>
    %24 = tpu.matmul %22, %23, %cst_20 {dimension_numbers = #tpu.dot_dimension_numbers<[1], [1], [0], [0], [0, 0, 1, 0], [], []>} : vector<8x8xf32>, vector<8x8xf32>, vector<8x8xf32> -> vector<8x8xf32>
    %25 = arith.addf %24, %5 : vector<8x8xf32>
    %cst_21 = arith.constant 6.250000e-02 : f32
    %26 = vector.broadcast %cst_21 : f32 to vector<8x8xf32>
    %27 = arith.mulf %25, %26 : vector<8x8xf32>
    %cst_22 = arith.constant dense<0xFF800000> : vector<8xf32>
    %28 = vector.multi_reduction <maximumf>, %27, %cst_22 [1] : vector<8x8xf32> to vector<8xf32>
    %29 = vector.shape_cast %28 : vector<8xf32> to vector<8x1xf32>
    %30 = vector.broadcast %29 : vector<8x1xf32> to vector<8x8xf32>
    %31 = arith.subf %27, %30 : vector<8x8xf32>
    %32 = math.exp %31 : vector<8x8xf32>
    %cst_23 = arith.constant dense<0.000000e+00> : vector<8xf32>
    %33 = vector.multi_reduction <add>, %32, %cst_23 [1] : vector<8x8xf32> to vector<8xf32>
    %34 = vector.shape_cast %33 : vector<8xf32> to vector<8x1xf32>
    %35 = tpu.reciprocal %34 {approx = true} : vector<8x1xf32> -> vector<8x1xf32>
    %36 = vector.broadcast %35 : vector<8x1xf32> to vector<8x8xf32>
    %37 = arith.mulf %32, %36 : vector<8x8xf32>
    %38 = vector.extract_strided_slice %19 {offsets = [0, 0], sizes = [8, 8], strides = [1, 1]} : vector<8x32xf32> to vector<8x8xf32>
    %cst_24 = arith.constant dense<0.000000e+00> : vector<8x8xf32>
    %39 = tpu.matmul %37, %38, %cst_24 {dimension_numbers = #tpu.dot_dimension_numbers<[1], [0], [0], [1], [0, 0, 1, 1], [], []>} : vector<8x8xf32>, vector<8x8xf32>, vector<8x8xf32> -> vector<8x8xf32>
    %40 = vector.extract_strided_slice %17 {offsets = [0, 0], sizes = [8, 8], strides = [1, 1]} : vector<8x32xf32> to vector<8x8xf32>
    %41 = arith.mulf %39, %40 : vector<8x8xf32>
    %42 = vector.extract_strided_slice %20 {offsets = [0, 0], sizes = [8, 32], strides = [1, 1]} : vector<32x32xf32> to vector<8x32xf32>
    %cst_25 = arith.constant dense<0.000000e+00> : vector<8x32xf32>
    %43 = tpu.matmul %41, %42, %cst_25 {dimension_numbers = #tpu.dot_dimension_numbers<[1], [0], [0], [1], [0, 0, 1, 1], [], []>} : vector<8x8xf32>, vector<8x32xf32>, vector<8x32xf32> -> vector<8x32xf32>
    %44 = arith.addf %21, %43 : vector<8x32xf32>
    %45 = vector.extract_strided_slice %16 {offsets = [0, 8], sizes = [8, 8], strides = [1, 1]} : vector<8x32xf32> to vector<8x8xf32>
    %46 = vector.extract_strided_slice %18 {offsets = [0, 8], sizes = [8, 8], strides = [1, 1]} : vector<8x32xf32> to vector<8x8xf32>
    %cst_26 = arith.constant dense<0.000000e+00> : vector<8x8xf32>
    %47 = tpu.matmul %45, %46, %cst_26 {dimension_numbers = #tpu.dot_dimension_numbers<[1], [1], [0], [0], [0, 0, 1, 0], [], []>} : vector<8x8xf32>, vector<8x8xf32>, vector<8x8xf32> -> vector<8x8xf32>
    %48 = arith.addf %47, %5 : vector<8x8xf32>
    %cst_27 = arith.constant 6.250000e-02 : f32
    %49 = vector.broadcast %cst_27 : f32 to vector<8x8xf32>
    %50 = arith.mulf %48, %49 : vector<8x8xf32>
    %cst_28 = arith.constant dense<0xFF800000> : vector<8xf32>
    %51 = vector.multi_reduction <maximumf>, %50, %cst_28 [1] : vector<8x8xf32> to vector<8xf32>
    %52 = vector.shape_cast %51 : vector<8xf32> to vector<8x1xf32>
    %53 = vector.broadcast %52 : vector<8x1xf32> to vector<8x8xf32>
    %54 = arith.subf %50, %53 : vector<8x8xf32>
    %55 = math.exp %54 : vector<8x8xf32>
    %cst_29 = arith.constant dense<0.000000e+00> : vector<8xf32>
    %56 = vector.multi_reduction <add>, %55, %cst_29 [1] : vector<8x8xf32> to vector<8xf32>
    %57 = vector.shape_cast %56 : vector<8xf32> to vector<8x1xf32>
    %58 = tpu.reciprocal %57 {approx = true} : vector<8x1xf32> -> vector<8x1xf32>
    %59 = vector.broadcast %58 : vector<8x1xf32> to vector<8x8xf32>
    %60 = arith.mulf %55, %59 : vector<8x8xf32>
    %61 = vector.extract_strided_slice %19 {offsets = [0, 8], sizes = [8, 8], strides = [1, 1]} : vector<8x32xf32> to vector<8x8xf32>
    %cst_30 = arith.constant dense<0.000000e+00> : vector<8x8xf32>
    %62 = tpu.matmul %60, %61, %cst_30 {dimension_numbers = #tpu.dot_dimension_numbers<[1], [0], [0], [1], [0, 0, 1, 1], [], []>} : vector<8x8xf32>, vector<8x8xf32>, vector<8x8xf32> -> vector<8x8xf32>
    %63 = vector.extract_strided_slice %17 {offsets = [0, 8], sizes = [8, 8], strides = [1, 1]} : vector<8x32xf32> to vector<8x8xf32>
    %64 = arith.mulf %62, %63 : vector<8x8xf32>
    %65 = vector.extract_strided_slice %20 {offsets = [8, 0], sizes = [8, 32], strides = [1, 1]} : vector<32x32xf32> to vector<8x32xf32>
    %cst_31 = arith.constant dense<0.000000e+00> : vector<8x32xf32>
    %66 = tpu.matmul %64, %65, %cst_31 {dimension_numbers = #tpu.dot_dimension_numbers<[1], [0], [0], [1], [0, 0, 1, 1], [], []>} : vector<8x8xf32>, vector<8x32xf32>, vector<8x32xf32> -> vector<8x32xf32>
    %67 = arith.addf %44, %66 : vector<8x32xf32>
    %68 = vector.extract_strided_slice %16 {offsets = [0, 16], sizes = [8, 8], strides = [1, 1]} : vector<8x32xf32> to vector<8x8xf32>
    %69 = vector.extract_strided_slice %18 {offsets = [0, 16], sizes = [8, 8], strides = [1, 1]} : vector<8x32xf32> to vector<8x8xf32>
    %cst_32 = arith.constant dense<0.000000e+00> : vector<8x8xf32>
    %70 = tpu.matmul %68, %69, %cst_32 {dimension_numbers = #tpu.dot_dimension_numbers<[1], [1], [0], [0], [0, 0, 1, 0], [], []>} : vector<8x8xf32>, vector<8x8xf32>, vector<8x8xf32> -> vector<8x8xf32>
    %71 = arith.addf %70, %5 : vector<8x8xf32>
    %cst_33 = arith.constant 6.250000e-02 : f32
    %72 = vector.broadcast %cst_33 : f32 to vector<8x8xf32>
    %73 = arith.mulf %71, %72 : vector<8x8xf32>
    %cst_34 = arith.constant dense<0xFF800000> : vector<8xf32>
    %74 = vector.multi_reduction <maximumf>, %73, %cst_34 [1] : vector<8x8xf32> to vector<8xf32>
    %75 = vector.shape_cast %74 : vector<8xf32> to vector<8x1xf32>
    %76 = vector.broadcast %75 : vector<8x1xf32> to vector<8x8xf32>
    %77 = arith.subf %73, %76 : vector<8x8xf32>
    %78 = math.exp %77 : vector<8x8xf32>
    %cst_35 = arith.constant dense<0.000000e+00> : vector<8xf32>
    %79 = vector.multi_reduction <add>, %78, %cst_35 [1] : vector<8x8xf32> to vector<8xf32>
    %80 = vector.shape_cast %79 : vector<8xf32> to vector<8x1xf32>
    %81 = tpu.reciprocal %80 {approx = true} : vector<8x1xf32> -> vector<8x1xf32>
    %82 = vector.broadcast %81 : vector<8x1xf32> to vector<8x8xf32>
    %83 = arith.mulf %78, %82 : vector<8x8xf32>
    %84 = vector.extract_strided_slice %19 {offsets = [0, 16], sizes = [8, 8], strides = [1, 1]} : vector<8x32xf32> to vector<8x8xf32>
    %cst_36 = arith.constant dense<0.000000e+00> : vector<8x8xf32>
    %85 = tpu.matmul %83, %84, %cst_36 {dimension_numbers = #tpu.dot_dimension_numbers<[1], [0], [0], [1], [0, 0, 1, 1], [], []>} : vector<8x8xf32>, vector<8x8xf32>, vector<8x8xf32> -> vector<8x8xf32>
    %86 = vector.extract_strided_slice %17 {offsets = [0, 16], sizes = [8, 8], strides = [1, 1]} : vector<8x32xf32> to vector<8x8xf32>
    %87 = arith.mulf %85, %86 : vector<8x8xf32>
    %88 = vector.extract_strided_slice %20 {offsets = [16, 0], sizes = [8, 32], strides = [1, 1]} : vector<32x32xf32> to vector<8x32xf32>
    %cst_37 = arith.constant dense<0.000000e+00> : vector<8x32xf32>
    %89 = tpu.matmul %87, %88, %cst_37 {dimension_numbers = #tpu.dot_dimension_numbers<[1], [0], [0], [1], [0, 0, 1, 1], [], []>} : vector<8x8xf32>, vector<8x32xf32>, vector<8x32xf32> -> vector<8x32xf32>
    %90 = arith.addf %67, %89 : vector<8x32xf32>
    %91 = vector.extract_strided_slice %16 {offsets = [0, 24], sizes = [8, 8], strides = [1, 1]} : vector<8x32xf32> to vector<8x8xf32>
    %92 = vector.extract_strided_slice %18 {offsets = [0, 24], sizes = [8, 8], strides = [1, 1]} : vector<8x32xf32> to vector<8x8xf32>
    %cst_38 = arith.constant dense<0.000000e+00> : vector<8x8xf32>
    %93 = tpu.matmul %91, %92, %cst_38 {dimension_numbers = #tpu.dot_dimension_numbers<[1], [1], [0], [0], [0, 0, 1, 0], [], []>} : vector<8x8xf32>, vector<8x8xf32>, vector<8x8xf32> -> vector<8x8xf32>
    %94 = arith.addf %93, %5 : vector<8x8xf32>
    %cst_39 = arith.constant 6.250000e-02 : f32
    %95 = vector.broadcast %cst_39 : f32 to vector<8x8xf32>
    %96 = arith.mulf %94, %95 : vector<8x8xf32>
    %cst_40 = arith.constant dense<0xFF800000> : vector<8xf32>
    %97 = vector.multi_reduction <maximumf>, %96, %cst_40 [1] : vector<8x8xf32> to vector<8xf32>
    %98 = vector.shape_cast %97 : vector<8xf32> to vector<8x1xf32>
    %99 = vector.broadcast %98 : vector<8x1xf32> to vector<8x8xf32>
    %100 = arith.subf %96, %99 : vector<8x8xf32>
    %101 = math.exp %100 : vector<8x8xf32>
    %cst_41 = arith.constant dense<0.000000e+00> : vector<8xf32>
    %102 = vector.multi_reduction <add>, %101, %cst_41 [1] : vector<8x8xf32> to vector<8xf32>
    %103 = vector.shape_cast %102 : vector<8xf32> to vector<8x1xf32>
    %104 = tpu.reciprocal %103 {approx = true} : vector<8x1xf32> -> vector<8x1xf32>
    %105 = vector.broadcast %104 : vector<8x1xf32> to vector<8x8xf32>
    %106 = arith.mulf %101, %105 : vector<8x8xf32>
    %107 = vector.extract_strided_slice %19 {offsets = [0, 24], sizes = [8, 8], strides = [1, 1]} : vector<8x32xf32> to vector<8x8xf32>
    %cst_42 = arith.constant dense<0.000000e+00> : vector<8x8xf32>
    %108 = tpu.matmul %106, %107, %cst_42 {dimension_numbers = #tpu.dot_dimension_numbers<[1], [0], [0], [1], [0, 0, 1, 1], [], []>} : vector<8x8xf32>, vector<8x8xf32>, vector<8x8xf32> -> vector<8x8xf32>
    %109 = vector.extract_strided_slice %17 {offsets = [0, 24], sizes = [8, 8], strides = [1, 1]} : vector<8x32xf32> to vector<8x8xf32>
    %110 = arith.mulf %108, %109 : vector<8x8xf32>
    %111 = vector.extract_strided_slice %20 {offsets = [24, 0], sizes = [8, 32], strides = [1, 1]} : vector<32x32xf32> to vector<8x32xf32>
    %cst_43 = arith.constant dense<0.000000e+00> : vector<8x32xf32>
    %112 = tpu.matmul %110, %111, %cst_43 {dimension_numbers = #tpu.dot_dimension_numbers<[1], [0], [0], [1], [0, 0, 1, 1], [], []>} : vector<8x8xf32>, vector<8x32xf32>, vector<8x32xf32> -> vector<8x32xf32>
    %113 = arith.addf %90, %112 : vector<8x32xf32>
    %c0_44 = arith.constant 0 : index
    %c0_45 = arith.constant 0 : index
    %114 = vector.load %arg8[%c0_44, %c0_45] : memref<1x32xf32, #tpu.memory_space<vmem>>, vector<1x32xf32>
    %115 = vector.broadcast %114 : vector<1x32xf32> to vector<8x32xf32>
    %116 = arith.addf %113, %115 : vector<8x32xf32>
    %c0_46 = arith.constant 0 : index
    %c0_47 = arith.constant 0 : index
    %c0_48 = arith.constant 0 : index
    %117 = vector.load %arg10[%c0_46, %c0_47, %c0_48] : memref<1x8x32xf32, #tpu.memory_space<vmem>>, vector<1x8x32xf32>
    %118 = vector.shape_cast %117 : vector<1x8x32xf32> to vector<8x32xf32>
    %119 = vector.shape_cast %116 : vector<8x32xf32> to vector<1x8x32xf32>
    tpu.vector_store %arg10[%c0_46, %c0_47, %c0_48], %119 {strides = array<i32>} : memref<1x8x32xf32, #tpu.memory_space<vmem>>, vector<1x8x32xf32>,
    return
  }
  func.func @transform_0(%arg0: i32) -> (i32, i32, i32) {
    %c0_i32 = arith.constant 0 : i32
    %c0_i32_0 = arith.constant 0 : i32
    %c0_i32_1 = arith.constant 0 : i32
    return %arg0, %c0_i32, %c0_i32_0 : i32, i32, i32
  }
  func.func @transform_1(%arg0: i32) -> (i32, i32, i32) {
    %c0_i32 = arith.constant 0 : i32
    %c0_i32_0 = arith.constant 0 : i32
    %c0_i32_1 = arith.constant 0 : i32
    return %arg0, %c0_i32, %c0_i32_0 : i32, i32, i32
  }
  func.func @transform_2(%arg0: i32) -> (i32, i32) {
    %c0_i32 = arith.constant 0 : i32
    %c0_i32_0 = arith.constant 0 : i32
    %c0_i32_1 = arith.constant 0 : i32
    return %c0_i32, %c0_i32_0 : i32, i32
  }
  func.func @transform_3(%arg0: i32) -> (i32, i32) {
    %c0_i32 = arith.constant 0 : i32
    %c0_i32_0 = arith.constant 0 : i32
    %c0_i32_1 = arith.constant 0 : i32
    return %c0_i32, %c0_i32_0 : i32, i32
  }
  func.func @transform_4(%arg0: i32) -> (i32, i32) {
    %c0_i32 = arith.constant 0 : i32
    %c0_i32_0 = arith.constant 0 : i32
    %c0_i32_1 = arith.constant 0 : i32
    return %c0_i32, %c0_i32_0 : i32, i32
  }
  func.func @transform_5(%arg0: i32) -> (i32, i32) {
    %c0_i32 = arith.constant 0 : i32
    %c0_i32_0 = arith.constant 0 : i32
    %c0_i32_1 = arith.constant 0 : i32
    return %c0_i32, %c0_i32_0 : i32, i32
  }
  func.func @transform_6(%arg0: i32) -> (i32, i32) {
    %c0_i32 = arith.constant 0 : i32
    %c0_i32_0 = arith.constant 0 : i32
    %c0_i32_1 = arith.constant 0 : i32
    return %c0_i32, %c0_i32_0 : i32, i32
  }
  func.func @transform_7(%arg0: i32) -> (i32, i32) {
    %c0_i32 = arith.constant 0 : i32
    %c0_i32_0 = arith.constant 0 : i32
    %c0_i32_1 = arith.constant 0 : i32
    return %c0_i32, %c0_i32_0 : i32, i32
  }
  func.func @transform_8(%arg0: i32) -> (i32, i32, i32) {
    %c0_i32 = arith.constant 0 : i32
    %c0_i32_0 = arith.constant 0 : i32
    %c0_i32_1 = arith.constant 0 : i32
    return %arg0, %c0_i32, %c0_i32_0 : i32, i32, i32
  }
  func.func @transform_9(%arg0: i32) -> (i32, i32, i32) {
    %c0_i32 = arith.constant 0 : i32
    %c0_i32_0 = arith.constant 0 : i32
    %c0_i32_1 = arith.constant 0 : i32
    return %arg0, %c0_i32, %c0_i32_0 : i32, i32, i32
  }
}

module attributes {stable_mosaic.version = 11 : i64} {
  func.func @_linear_kernel(%arg0: i32, %arg1: memref<16x32xf32, #tpu.memory_space<vmem>>, %arg2: memref<32x128xf32, #tpu.memory_space<vmem>>, %arg3: memref<1x128xf32, #tpu.memory_space<vmem>>, %arg4: memref<16x128xf32, #tpu.memory_space<vmem>>) attributes {dimension_semantics = [#tpu.dimension_semantics<parallel>], iteration_bounds = array<i64: 1>, scalar_prefetch = 0 : i64, scratch_operands = 0 : i64, tpu.core_type = #tpu.core_type<tc>, window_params = [{transform_indices = @transform_0, window_bounds = array<i64: 16, 32>}, {pipeline_mode = #tpu.pipeline_mode<synchronous>, transform_indices = @transform_1, window_bounds = array<i64: 32, 128>}, {pipeline_mode = #tpu.pipeline_mode<synchronous>, transform_indices = @transform_2, window_bounds = array<i64: 1, 128>}, {transform_indices = @transform_3, window_bounds = array<i64: 16, 128>}]} {
    %c0 = arith.constant 0 : index
    %c0_0 = arith.constant 0 : index
    %0 = vector.load %arg1[%c0, %c0_0] : memref<16x32xf32, #tpu.memory_space<vmem>>, vector<16x32xf32>
    %c0_1 = arith.constant 0 : index
    %c0_2 = arith.constant 0 : index
    %1 = vector.load %arg2[%c0_1, %c0_2] : memref<32x128xf32, #tpu.memory_space<vmem>>, vector<32x128xf32>
    %cst = arith.constant dense<0.000000e+00> : vector<16x128xf32>
    %2 = tpu.matmul %0, %1, %cst {dimension_numbers = #tpu.dot_dimension_numbers<[1], [0], [0], [1], [0, 0, 1, 1], [], []>} : vector<16x32xf32>, vector<32x128xf32>, vector<16x128xf32> -> vector<16x128xf32>
    %c0_3 = arith.constant 0 : index
    %c0_4 = arith.constant 0 : index
    %3 = vector.load %arg3[%c0_3, %c0_4] : memref<1x128xf32, #tpu.memory_space<vmem>>, vector<1x128xf32>
    %4 = vector.broadcast %3 : vector<1x128xf32> to vector<16x128xf32>
    %5 = arith.addf %2, %4 : vector<16x128xf32>
    %c0_5 = arith.constant 0 : index
    %c0_6 = arith.constant 0 : index
    %6 = vector.load %arg4[%c0_5, %c0_6] : memref<16x128xf32, #tpu.memory_space<vmem>>, vector<16x128xf32>
    tpu.vector_store %arg4[%c0_5, %c0_6], %5 {strides = array<i32>} : memref<16x128xf32, #tpu.memory_space<vmem>>, vector<16x128xf32>,
    return
  }
  func.func @transform_0(%arg0: i32) -> (i32, i32) {
    %c0_i32 = arith.constant 0 : i32
    %c0_i32_0 = arith.constant 0 : i32
    return %arg0, %c0_i32 : i32, i32
  }
  func.func @transform_1(%arg0: i32) -> (i32, i32) {
    %c0_i32 = arith.constant 0 : i32
    %c0_i32_0 = arith.constant 0 : i32
    %c0_i32_1 = arith.constant 0 : i32
    return %c0_i32, %c0_i32_0 : i32, i32
  }
  func.func @transform_2(%arg0: i32) -> (i32, i32) {
    %c0_i32 = arith.constant 0 : i32
    %c0_i32_0 = arith.constant 0 : i32
    %c0_i32_1 = arith.constant 0 : i32
    return %c0_i32, %c0_i32_0 : i32, i32
  }
  func.func @transform_3(%arg0: i32) -> (i32, i32) {
    %c0_i32 = arith.constant 0 : i32
    %c0_i32_0 = arith.constant 0 : i32
    return %arg0, %c0_i32 : i32, i32
  }
}

module attributes {stable_mosaic.version = 11 : i64} {
  func.func @_ffn_ln_kernel(%arg0: i32, %arg1: memref<16x32xf32, #tpu.memory_space<vmem>>, %arg2: memref<32x128xf32, #tpu.memory_space<vmem>>, %arg3: memref<1x128xf32, #tpu.memory_space<vmem>>, %arg4: memref<128x32xf32, #tpu.memory_space<vmem>>, %arg5: memref<1x32xf32, #tpu.memory_space<vmem>>, %arg6: memref<1x32xf32, #tpu.memory_space<vmem>>, %arg7: memref<1x32xf32, #tpu.memory_space<vmem>>, %arg8: memref<16x32xf32, #tpu.memory_space<vmem>>) attributes {dimension_semantics = [#tpu.dimension_semantics<parallel>], iteration_bounds = array<i64: 1>, scalar_prefetch = 0 : i64, scratch_operands = 0 : i64, tpu.core_type = #tpu.core_type<tc>, window_params = [{transform_indices = @transform_0, window_bounds = array<i64: 16, 32>}, {pipeline_mode = #tpu.pipeline_mode<synchronous>, transform_indices = @transform_1, window_bounds = array<i64: 32, 128>}, {pipeline_mode = #tpu.pipeline_mode<synchronous>, transform_indices = @transform_2, window_bounds = array<i64: 1, 128>}, {pipeline_mode = #tpu.pipeline_mode<synchronous>, transform_indices = @transform_3, window_bounds = array<i64: 128, 32>}, {pipeline_mode = #tpu.pipeline_mode<synchronous>, transform_indices = @transform_4, window_bounds = array<i64: 1, 32>}, {pipeline_mode = #tpu.pipeline_mode<synchronous>, transform_indices = @transform_5, window_bounds = array<i64: 1, 32>}, {pipeline_mode = #tpu.pipeline_mode<synchronous>, transform_indices = @transform_6, window_bounds = array<i64: 1, 32>}, {transform_indices = @transform_7, window_bounds = array<i64: 16, 32>}]} {
    %c0 = arith.constant 0 : index
    %c0_0 = arith.constant 0 : index
    %0 = vector.load %arg1[%c0, %c0_0] : memref<16x32xf32, #tpu.memory_space<vmem>>, vector<16x32xf32>
    %c0_1 = arith.constant 0 : index
    %c0_2 = arith.constant 0 : index
    %1 = vector.load %arg2[%c0_1, %c0_2] : memref<32x128xf32, #tpu.memory_space<vmem>>, vector<32x128xf32>
    %cst = arith.constant dense<0.000000e+00> : vector<16x128xf32>
    %2 = tpu.matmul %0, %1, %cst {dimension_numbers = #tpu.dot_dimension_numbers<[1], [0], [0], [1], [0, 0, 1, 1], [], []>} : vector<16x32xf32>, vector<32x128xf32>, vector<16x128xf32> -> vector<16x128xf32>
    %c0_3 = arith.constant 0 : index
    %c0_4 = arith.constant 0 : index
    %3 = vector.load %arg3[%c0_3, %c0_4] : memref<1x128xf32, #tpu.memory_space<vmem>>, vector<1x128xf32>
    %4 = vector.broadcast %3 : vector<1x128xf32> to vector<16x128xf32>
    %5 = arith.addf %2, %4 : vector<16x128xf32>
    %cst_5 = arith.constant 0.000000e+00 : f32
    %6 = vector.broadcast %cst_5 : f32 to vector<16x128xf32>
    %7 = arith.maximumf %5, %6 : vector<16x128xf32>
    %c0_6 = arith.constant 0 : index
    %c0_7 = arith.constant 0 : index
    %8 = vector.load %arg4[%c0_6, %c0_7] : memref<128x32xf32, #tpu.memory_space<vmem>>, vector<128x32xf32>
    %cst_8 = arith.constant dense<0.000000e+00> : vector<16x32xf32>
    %9 = tpu.matmul %7, %8, %cst_8 {dimension_numbers = #tpu.dot_dimension_numbers<[1], [0], [0], [1], [0, 0, 1, 1], [], []>} : vector<16x128xf32>, vector<128x32xf32>, vector<16x32xf32> -> vector<16x32xf32>
    %c0_9 = arith.constant 0 : index
    %c0_10 = arith.constant 0 : index
    %10 = vector.load %arg5[%c0_9, %c0_10] : memref<1x32xf32, #tpu.memory_space<vmem>>, vector<1x32xf32>
    %11 = vector.broadcast %10 : vector<1x32xf32> to vector<16x32xf32>
    %12 = arith.addf %9, %11 : vector<16x32xf32>
    %13 = arith.addf %12, %0 : vector<16x32xf32>
    %cst_11 = arith.constant dense<0.000000e+00> : vector<16xf32>
    %14 = vector.multi_reduction <add>, %13, %cst_11 [1] : vector<16x32xf32> to vector<16xf32>
    %15 = vector.shape_cast %14 : vector<16xf32> to vector<16x1xf32>
    %cst_12 = arith.constant 3.200000e+01 : f32
    %16 = vector.broadcast %cst_12 : f32 to vector<16x1xf32>
    %17 = arith.divf %15, %16 : vector<16x1xf32>
    %18 = vector.broadcast %17 : vector<16x1xf32> to vector<16x32xf32>
    %19 = arith.subf %13, %18 : vector<16x32xf32>
    %20 = arith.mulf %19, %19 : vector<16x32xf32>
    %cst_13 = arith.constant dense<0.000000e+00> : vector<16xf32>
    %21 = vector.multi_reduction <add>, %20, %cst_13 [1] : vector<16x32xf32> to vector<16xf32>
    %22 = vector.shape_cast %21 : vector<16xf32> to vector<16x1xf32>
    %cst_14 = arith.constant 3.200000e+01 : f32
    %23 = vector.broadcast %cst_14 : f32 to vector<16x1xf32>
    %24 = arith.divf %22, %23 : vector<16x1xf32>
    %25 = vector.broadcast %17 : vector<16x1xf32> to vector<16x32xf32>
    %26 = arith.subf %13, %25 : vector<16x32xf32>
    %cst_15 = arith.constant 9.99999974E-6 : f32
    %27 = vector.broadcast %cst_15 : f32 to vector<16x1xf32>
    %28 = arith.addf %24, %27 : vector<16x1xf32>
    %29 = math.rsqrt %28 : vector<16x1xf32>
    %30 = vector.broadcast %29 : vector<16x1xf32> to vector<16x32xf32>
    %31 = arith.mulf %26, %30 : vector<16x32xf32>
    %c0_16 = arith.constant 0 : index
    %c0_17 = arith.constant 0 : index
    %32 = vector.load %arg6[%c0_16, %c0_17] : memref<1x32xf32, #tpu.memory_space<vmem>>, vector<1x32xf32>
    %33 = vector.broadcast %32 : vector<1x32xf32> to vector<16x32xf32>
    %34 = arith.mulf %31, %33 : vector<16x32xf32>
    %c0_18 = arith.constant 0 : index
    %c0_19 = arith.constant 0 : index
    %35 = vector.load %arg7[%c0_18, %c0_19] : memref<1x32xf32, #tpu.memory_space<vmem>>, vector<1x32xf32>
    %36 = vector.broadcast %35 : vector<1x32xf32> to vector<16x32xf32>
    %37 = arith.addf %34, %36 : vector<16x32xf32>
    %c0_20 = arith.constant 0 : index
    %c0_21 = arith.constant 0 : index
    %38 = vector.load %arg8[%c0_20, %c0_21] : memref<16x32xf32, #tpu.memory_space<vmem>>, vector<16x32xf32>
    tpu.vector_store %arg8[%c0_20, %c0_21], %37 {strides = array<i32>} : memref<16x32xf32, #tpu.memory_space<vmem>>, vector<16x32xf32>,
    return
  }
  func.func @transform_0(%arg0: i32) -> (i32, i32) {
    %c0_i32 = arith.constant 0 : i32
    %c0_i32_0 = arith.constant 0 : i32
    return %arg0, %c0_i32 : i32, i32
  }
  func.func @transform_1(%arg0: i32) -> (i32, i32) {
    %c0_i32 = arith.constant 0 : i32
    %c0_i32_0 = arith.constant 0 : i32
    %c0_i32_1 = arith.constant 0 : i32
    return %c0_i32, %c0_i32_0 : i32, i32
  }
  func.func @transform_2(%arg0: i32) -> (i32, i32) {
    %c0_i32 = arith.constant 0 : i32
    %c0_i32_0 = arith.constant 0 : i32
    %c0_i32_1 = arith.constant 0 : i32
    return %c0_i32, %c0_i32_0 : i32, i32
  }
  func.func @transform_3(%arg0: i32) -> (i32, i32) {
    %c0_i32 = arith.constant 0 : i32
    %c0_i32_0 = arith.constant 0 : i32
    %c0_i32_1 = arith.constant 0 : i32
    return %c0_i32, %c0_i32_0 : i32, i32
  }
  func.func @transform_4(%arg0: i32) -> (i32, i32) {
    %c0_i32 = arith.constant 0 : i32
    %c0_i32_0 = arith.constant 0 : i32
    %c0_i32_1 = arith.constant 0 : i32
    return %c0_i32, %c0_i32_0 : i32, i32
  }
  func.func @transform_5(%arg0: i32) -> (i32, i32) {
    %c0_i32 = arith.constant 0 : i32
    %c0_i32_0 = arith.constant 0 : i32
    %c0_i32_1 = arith.constant 0 : i32
    return %c0_i32, %c0_i32_0 : i32, i32
  }
  func.func @transform_6(%arg0: i32) -> (i32, i32) {
    %c0_i32 = arith.constant 0 : i32
    %c0_i32_0 = arith.constant 0 : i32
    %c0_i32_1 = arith.constant 0 : i32
    return %c0_i32, %c0_i32_0 : i32, i32
  }
  func.func @transform_7(%arg0: i32) -> (i32, i32) {
    %c0_i32 = arith.constant 0 : i32
    %c0_i32_0 = arith.constant 0 : i32
    return %arg0, %c0_i32 : i32, i32
  }
}

</mosaic_0001>

<bundles_post_ra>
// kernel: decoder_forward.21
= control target key start
LH: loop header
LB: loop body
LE: loop exit
PB: predicated region body
PF: predicated region fallthrough
CT: control target
= control target key end

     0   :  { %vm28_vm0 = vcmask 261120   ;;  %s239_s0 = inlined_call_operand.vmem [shape: f32[16,32], index: 0, kind: input, shape index: {}]   ;;  %s240_s1 = inlined_call_operand.vmem [shape: f32[32,128], index: 1, kind: input, shape index: {}]   ;;  %s241_s2 = inlined_call_operand.vmem [shape: f32[1,128], index: 2, kind: input, shape index: {}]   ;;  %s242_s3 = inlined_call_operand.hbm [shape: f32[16,128], index: 3, kind: output, shape index: {}]  }
   0x1   :  { %v17_v0 = vld [vmem:[%s240_s1] sm:$0xff]  ;;  %v18_v1 = vld [vmem:[%s240_s1 + $0x8] sm:$0xff]  ;;  %v19_v2 = vld [vmem:[%s240_s1 + $0x10] sm:$0xff] }
   0x2   :  { %v148_v3 = vpack.c.bf16 %v18_v1, %v17_v0  ;;  %v20_v4 = vld [vmem:[%s240_s1 + $0x18] sm:$0xff]  ;;  %v15_v5 = vld [vmem:[%s239_s0] sm:$0xff] }
   0x3   :  { %v152_v6 = vpack.c.bf16 %v20_v4, %v19_v2  ;;  %145 = vmatprep.mubr.msk.f32.mxu0 %vm28_vm0, %v15_v5 }
   0x4   :  { %8 = vsyncpa [#allocation3], 0  ;;  %149 = vmatprep.subr.bf16.mxu0 %v148_v3  ;;  %v16_v7 = vld [vmem:[%s239_s0 + $0x8] sm:$0xff]  ;;  %v128_v8 = vld [vmem:[%s241_s2] ss:$0 sm:$0xff]  ;;  %s183_s1 = smov [#allocation2]  }
   0x5   :  { %151 = vmatpush3.bf16.msra.mxu0 %v148_v3  ;;  %s117_s26 = sshll.u32 %s183_s1, 4  ;;  %s118_s26 = int_to_ptr.vmem [resolvable:$true] %s117_s26 }
   0x6   :  { %153 = vmatprep.subr.bf16.mxu0 %v152_v6  ;;  %s159_s27 = scalar_lea.vmem %s118_s26, 256  ;;  %p164_p1 = scmp.lt.s32.totalorder %s118_s26, %s118_s26 }
   0x7   :  { %p160_p0 = scmp.ne.s32.totalorder %s118_s26, %s159_s27  ;;  %p165_p2 = scmp.lt.s32.totalorder %s159_s27, %s159_s27 }
   0x9   :  { %155 = vmatpush3.bf16.msra.mxu0 %v152_v6  ;;  %p166_p3 = por %p165_p2, %p164_p1 }
   0xb   :  { %p167_p4 = pnand %p166_p3, %p160_p0 }
   0xc   :  { %146 = vmatmul.mubr.msk.f32.vlgmr.msra.gmra.mrb[0].mxu0 %vm28_vm0, %v16_v7 }
  0xdf   :  { %v147_v9 = vpop.f32.mrb[0].mxu0 }
  0xe0   :  { %v107_v10 = vadd.f32 %v147_v9, %v128_v8  ;;  %v101_v11 = vpop.f32.mrb[1].mxu0 }
  0xe1   :  { %v102_v12 = vadd.f32 %v128_v8, %v101_v11 }
  0xe2   :  { %111 = vst [vmem:[#allocation2 + $0x8] sm:$0xff] %v107_v10 }
  0xe3   :  { %110 = vst [vmem:[#allocation2] sm:$0xff] %v102_v12 }
  0xe4   :  { %170 = shalt.err (!%p167_p4)
}
  0xe5   :  { %s171_s2 = scalar_lea.hbm %s242_s3, 256 }
  0xe6   :  { %p172_p5 = scmp.ne.s32.totalorder %s242_s3, %s171_s2  ;;  %p175_p6 = scmp.lt.u32.totalorder %s171_s2, %s242_s3 }
  0xe8   :  { %p177_p7 = pnand %p175_p6, %p172_p5 }
  0xea   :  { %180 = shalt.err (!%p177_p7)
}
  0xeb   :  { %s184_s6 = smov 128   ;;  %s185_s7 = smov 8  }
  0xec   :  { %123 = dma.vmem_to_hbm [thread:$0]  %s118_s26, 256, %s242_s3, [#allocation3], %s184_s6, %s184_s6, %s185_s7  }
  0xed   :  { %181 = dma.done.wait [#allocation3], 256  }
  0xee   :  { %182 = vsyncadd [#allocation3], 4294967040 }
  0xef   :  { %127 = vsyncpa [#allocation3], 1 }

// kernel: decoder_forward.12
= control target key start
LH: loop header
LB: loop body
LE: loop exit
PB: predicated region body
PF: predicated region fallthrough
CT: control target
= control target key end

     0   :  { %vm23_vm0 = vcmask 261120   ;;  %s136_s0 = inlined_call_operand.vmem [shape: f32[16,32], index: 0, kind: input, shape index: {}]   ;;  %s137_s1 = inlined_call_operand.vmem [shape: f32[16,32], index: 1, kind: input, shape index: {}]   ;;  %s138_s2 = inlined_call_operand.vmem [shape: f32[1,32], index: 2, kind: input, shape index: {}]   ;;  %s139_s3 = inlined_call_operand.vmem [shape: f32[1,32], index: 3, kind: input, shape index: {}]   ;;  %s140_s4 = inlined_call_operand.vmem [shape: f32[16,32], index: 4, kind: output, shape index: {}]  }
   0x1   :  { %v17_v0 = vld [vmem:[%s136_s0] sm:$0xff]  ;;  %v18_v2 = vld [vmem:[%s136_s0 + $0x8] sm:$0xff] }
   0x2   :  { %v19_v1 = vld [vmem:[%s137_s1] sm:$0xff]  ;;  %v20_v4 = vld [vmem:[%s137_s1 + $0x8] sm:$0xff] }
   0x3   :  { %v21_v3 = vadd.f32 %v19_v1, %v17_v0  ;;  %v22_v5 = vadd.f32 %v20_v4, %v18_v2  ;;  %v75_v25 = vld [vmem:[%s138_s2] ss:$0 sm:$0xff] }
   0x4   :  { %v76_v27 = vld [vmem:[%s139_s3] ss:$0 sm:$0xff] }
   0x5   :  { %v24_v6 = vsel %vm23_vm0, %v21_v3, 0.0  ;;  %v27_v7 = vsel %vm23_vm0, %v22_v5, 0.0 }
   0x6   :  { %25 = vadd.xlane.f32.xlu0 %v24_v6 }
   0xa   :  { %28 = vadd.xlane.f32.xlu0 %v27_v7 }
  0x93   :  { %v26_v8 = vpop.xlane.xlu0 %25 }
  0x94   :  { %v31_v9 = vmul.f32 0.03125, %v26_v8 }
  0x96   :  { %v33_v10 = vsub.f32 %v21_v3, %v31_v9 }
  0x97   :  { %v29_v11 = vpop.xlane.xlu0 %28 }
  0x98   :  { %v32_v12 = vmul.f32 0.03125, %v29_v11  ;;  %v35_v13 = vmul.f32 %v33_v10, %v33_v10 }
  0x9a   :  { %v34_v14 = vsub.f32 %v22_v5, %v32_v12  ;;  %v37_v15 = vsel %vm23_vm0, %v35_v13, 0.0 }
  0x9b   :  { %38 = vadd.xlane.f32.xlu1 %v37_v15 }
  0x9c   :  { %v36_v16 = vmul.f32 %v34_v14, %v34_v14 }
  0x9e   :  { %v40_v17 = vsel %vm23_vm0, %v36_v16, 0.0 }
  0x9f   :  { %41 = vadd.xlane.f32.xlu1 %v40_v17 }
 0x128   :  { %v39_v18 = vpop.xlane.xlu1 %38 }
 0x129   :  { %v43_v19 = vmul.f32 0.03125, %v39_v18 }
 0x12b   :  { %v45_v20 = vadd.f32 1e-05, %v43_v19 }
 0x12c   :  { %v42_v21 = vpop.xlane.xlu1 %41 }
 0x12d   :  { %77 = vrsqrt.f32 %v45_v20  ;;  %v44_v22 = vmul.f32 0.03125, %v42_v21 }
 0x12f   :  { %v46_v23 = vadd.f32 1e-05, %v44_v22 }
 0x131   :  { %79 = vrsqrt.f32 %v46_v23 }
 0x137   :  { %v78_v24 = vpop.eup %77 }
 0x138   :  { %v49_v26 = vmul.f32 %v78_v24, %v33_v10 }
 0x13a   :  { %v58_v28 = vmul.f32 %v75_v25, %v49_v26 }
 0x13b   :  { %v80_v29 = vpop.eup %79 }
 0x13c   :  { %v67_v30 = vadd.f32 %v76_v27, %v58_v28  ;;  %v50_v31 = vmul.f32 %v80_v29, %v34_v14 }
 0x13e   :  { %69 = vst.msk [vmem:[%s140_s4] sm:$0xff] %vm23_vm0, %v67_v30  ;;  %v59_v32 = vmul.f32 %v75_v25, %v50_v31 }
 0x140   :  { %v68_v33 = vadd.f32 %v76_v27, %v59_v32 }
 0x142   :  { %70 = vst.msk [vmem:[%s140_s4 + $0x8] sm:$0xff] %vm23_vm0, %v68_v33 }

// kernel: decoder_forward.15
= control target key start
LH: loop header
LB: loop body
LE: loop exit
PB: predicated region body
PF: predicated region fallthrough
CT: control target
= control target key end

     0   :  { %vm39_vm0 = vcmask 261120   ;;  %s530_s1 = inlined_call_operand.vmem [shape: f32[32,128], index: 1, kind: input, shape index: {}]   ;;  %s531_s0 = inlined_call_operand.vmem [shape: f32[16,32], index: 0, kind: input, shape index: {}]   ;;  %s532_s3 = inlined_call_operand.vmem [shape: f32[128,32], index: 3, kind: input, shape index: {}]   ;;  %s533_s2 = inlined_call_operand.vmem [shape: f32[1,128], index: 2, kind: input, shape index: {}]   ;;  %s534_s4 = inlined_call_operand.vmem [shape: f32[1,32], index: 4, kind: input, shape index: {}]   ;;  %s535_s5 = inlined_call_operand.vmem [shape: f32[1,32], index: 5, kind: input, shape index: {}]   ;;  %s536_s6 = inlined_call_operand.vmem [shape: f32[1,32], index: 6, kind: input, shape index: {}]   ;;  %s537_s7 = inlined_call_operand.vmem [shape: f32[16,32], index: 7, kind: output, shape index: {}]  }
   0x1   :  { %v28_v0 = vld [vmem:[%s530_s1] sm:$0xff]  ;;  %v29_v1 = vld [vmem:[%s530_s1 + $0x8] sm:$0xff]  ;;  %v30_v2 = vld [vmem:[%s530_s1 + $0x10] sm:$0xff] }
   0x2   :  { %v350_v3 = vpack.c.bf16 %v29_v1, %v28_v0  ;;  %v31_v4 = vld [vmem:[%s530_s1 + $0x18] sm:$0xff]  ;;  %v449_v5 = vld [vmem:[%s531_s0] sm:$0xff]  ;;  %v124_v8 = vld [vmem:[%s532_s3 + $0x8] sm:$0xff] }
   0x3   :  { %v354_v6 = vpack.c.bf16 %v31_v4, %v30_v2  ;;  %312 = vmatprep.mubr.msk.f32.mxu0 %vm39_vm0, %v449_v5  ;;  %v123_v7 = vld [vmem:[%s532_s3] sm:$0xff]  ;;  %v125_v9 = vld [vmem:[%s532_s3 + $0x10] sm:$0xff]  ;;  %v126_v11 = vld [vmem:[%s532_s3 + $0x18] sm:$0xff] }
   0x4   :  { %351 = vmatprep.subr.bf16.mxu0 %v350_v3  ;;  %v358_v10 = vpack.c.bf16 %v124_v8, %v123_v7  ;;  %v362_v12 = vpack.c.bf16 %v126_v11, %v125_v9  ;;  %v127_v13 = vld [vmem:[%s532_s3 + $0x20] sm:$0xff]  ;;  %v128_v14 = vld [vmem:[%s532_s3 + $0x28] sm:$0xff]  ;;  %v129_v17 = vld [vmem:[%s532_s3 + $0x30] sm:$0xff] }
   0x5   :  { %353 = vmatpush3.bf16.msra.mxu0 %v350_v3  ;;  %v366_v15 = vpack.c.bf16 %v128_v14, %v127_v13  ;;  %v27_v16 = vld [vmem:[%s531_s0 + $0x8] sm:$0xff]  ;;  %v130_v18 = vld [vmem:[%s532_s3 + $0x38] sm:$0xff]  ;;  %v131_v20 = vld [vmem:[%s532_s3 + $0x40] sm:$0xff] }
   0x6   :  { %355 = vmatprep.subr.bf16.mxu0 %v354_v6  ;;  %359 = vmatprep.subr.bf16.mxu1 %v358_v10  ;;  %v370_v19 = vpack.c.bf16 %v130_v18, %v129_v17  ;;  %v132_v21 = vld [vmem:[%s532_s3 + $0x48] sm:$0xff]  ;;  %v133_v23 = vld [vmem:[%s532_s3 + $0x50] sm:$0xff]  ;;  %v134_v24 = vld [vmem:[%s532_s3 + $0x58] sm:$0xff] }
   0x7   :  { %361 = vmatpush3.bf16.msra.mxu1 %v358_v10  ;;  %v374_v22 = vpack.c.bf16 %v132_v21, %v131_v20  ;;  %v378_v25 = vpack.c.bf16 %v134_v24, %v133_v23  ;;  %v135_v26 = vld [vmem:[%s532_s3 + $0x60] sm:$0xff]  ;;  %v136_v27 = vld [vmem:[%s532_s3 + $0x68] sm:$0xff]  ;;  %v137_v29 = vld [vmem:[%s532_s3 + $0x70] sm:$0xff] }
   0x8   :  { %363 = vmatprep.subr.bf16.mxu1 %v362_v12  ;;  %v382_v28 = vpack.c.bf16 %v136_v27, %v135_v26  ;;  %v138_v30 = vld [vmem:[%s532_s3 + $0x78] sm:$0xff]  ;;  %v274_v32 = vld [vmem:[%s533_s2] ss:$0 sm:$0xff] }
   0x9   :  { %357 = vmatpush3.bf16.msra.mxu0 %v354_v6  ;;  %v386_v31 = vpack.c.bf16 %v138_v30, %v137_v29  ;;  %v277_v39 = vld [vmem:[%s534_s4] ss:$0 sm:$0xff] }
   0xa   :  { %v278_v1 = vld [vmem:[%s535_s5] ss:$0 sm:$0xff] }
   0xb   :  { %365 = vmatpush3.bf16.msra.mxu1 %v362_v12  ;;  %v279_v3 = vld [vmem:[%s536_s6] ss:$0 sm:$0xff] }
   0xc   :  { %313 = vmatmul.mubr.msk.f32.vlgmr.msra.gmra.mrb[0].mxu0 %vm39_vm0, %v27_v16  ;;  %367 = vmatprep.subr.bf16.mxu1 %v366_v15 }
   0xf   :  { %369 = vmatpush3.bf16.msra.mxu1 %v366_v15 }
  0x10   :  { %371 = vmatprep.subr.bf16.mxu1 %v370_v19 }
  0x13   :  { %373 = vmatpush3.bf16.msra.mxu1 %v370_v19 }
  0x14   :  { %375 = vmatprep.subr.bf16.mxu1 %v374_v22 }
  0x17   :  { %377 = vmatpush3.bf16.msra.mxu1 %v374_v22 }
  0x18   :  { %379 = vmatprep.subr.bf16.mxu1 %v378_v25 }
  0x1b   :  { %381 = vmatpush3.bf16.msra.mxu1 %v378_v25 }
  0x1c   :  { %383 = vmatprep.subr.bf16.mxu1 %v382_v28 }
  0x1f   :  { %385 = vmatpush3.bf16.msra.mxu1 %v382_v28 }
  0x20   :  { %387 = vmatprep.subr.bf16.mxu1 %v386_v31 }
  0x23   :  { %389 = vmatpush3.bf16.msra.mxu1 %v386_v31 }
  0xdf   :  { %v314_v33 = vpop.f32.mrb[0].mxu0 }
  0xe0   :  { %v118_v34 = vadd.f32 %v314_v33, %v274_v32  ;;  %v112_v35 = vpop.f32.mrb[1].mxu0 }
  0xe1   :  { %v113_v36 = vadd.f32 %v274_v32, %v112_v35 }
  0xe2   :  { %v122_v38 = vmax.f32 %v118_v34, 0.0 }
  0xe3   :  { %v121_v37 = vmax.f32 %v113_v36, 0.0 }
  0xe5   :  { %347 = vmatprep.mubr.f32.mxu1 %v121_v37 }
  0xe6   :  { %348 = vmatmul.mubr.f32.vlgmr.msra.gmra.mrb[0].mxu1 %v122_v38 }
 0x1b9   :  { %v349_v40 = vpop.f32.mrb[0].mxu1 }
 0x1ba   :  { %v212_v41 = vpop.f32.mrb[1].mxu1  ;;  %v218_v42 = vadd.f32 %v349_v40, %v277_v39 }
 0x1bb   :  { %v213_v43 = vadd.f32 %v277_v39, %v212_v41 }
 0x1bc   :  { %v222_v46 = vadd.f32 %v218_v42, %v27_v16 }
 0x1bd   :  { %v221_v44 = vadd.f32 %v213_v43, %v449_v5 }
 0x1be   :  { %v226_v47 = vsel %vm39_vm0, %v222_v46, 0.0 }
 0x1bf   :  { %v223_v45 = vsel %vm39_vm0, %v221_v44, 0.0 }
 0x1c0   :  { %224 = vadd.xlane.f32.xlu0 %v223_v45 }
 0x1c4   :  { %227 = vadd.xlane.f32.xlu0 %v226_v47 }
 0x24d   :  { %v225_v48 = vpop.xlane.xlu0 %224 }
 0x24e   :  { %v230_v49 = vmul.f32 0.03125, %v225_v48 }
 0x250   :  { %v232_v50 = vsub.f32 %v221_v44, %v230_v49 }
 0x251   :  { %v228_v51 = vpop.xlane.xlu0 %227 }
 0x252   :  { %v231_v52 = vmul.f32 0.03125, %v228_v51  ;;  %v234_v53 = vmul.f32 %v232_v50, %v232_v50 }
 0x254   :  { %v233_v54 = vsub.f32 %v222_v46, %v231_v52  ;;  %v236_v55 = vsel %vm39_vm0, %v234_v53, 0.0 }
 0x255   :  { %237 = vadd.xlane.f32.xlu1 %v236_v55 }
 0x256   :  { %v235_v56 = vmul.f32 %v233_v54, %v233_v54 }
 0x258   :  { %v239_v57 = vsel %vm39_vm0, %v235_v56, 0.0 }
 0x259   :  { %240 = vadd.xlane.f32.xlu1 %v239_v57 }
 0x2e2   :  { %v238_v58 = vpop.xlane.xlu1 %237 }
 0x2e3   :  { %v242_v59 = vmul.f32 0.03125, %v238_v58 }
 0x2e5   :  { %v244_v60 = vadd.f32 1e-05, %v242_v59 }
 0x2e6   :  { %v241_v61 = vpop.xlane.xlu1 %240 }
 0x2e7   :  { %390 = vrsqrt.f32 %v244_v60  ;;  %v243_v62 = vmul.f32 0.03125, %v241_v61 }
 0x2e9   :  { %v245_v63 = vadd.f32 1e-05, %v243_v62 }
 0x2eb   :  { %392 = vrsqrt.f32 %v245_v63 }
 0x2f1   :  { %v391_v0 = vpop.eup %390 }
 0x2f2   :  { %v248_v2 = vmul.f32 %v391_v0, %v232_v50 }
 0x2f4   :  { %v257_v4 = vmul.f32 %v278_v1, %v248_v2 }
 0x2f5   :  { %v393_v5 = vpop.eup %392 }
 0x2f6   :  { %v266_v6 = vadd.f32 %v279_v3, %v257_v4  ;;  %v249_v7 = vmul.f32 %v393_v5, %v233_v54 }
 0x2f8   :  { %268 = vst.msk [vmem:[%s537_s7] sm:$0xff] %vm39_vm0, %v266_v6  ;;  %v258_v8 = vmul.f32 %v278_v1, %v249_v7 }
 0x2fa   :  { %v267_v9 = vadd.f32 %v279_v3, %v258_v8 }
 0x2fc   :  { %269 = vst.msk [vmem:[%s537_s7 + $0x8] sm:$0xff] %vm39_vm0, %v267_v9 }

// kernel: decoder_forward.11
= control target key start
LH: loop header
LB: loop body
LE: loop exit
PB: predicated region body
PF: predicated region fallthrough
CT: control target
= control target key end

     0   :  { %s1859_s30 = smov 0   ;;  %s2028_s0 = inlined_call_operand.vmem [shape: f32[2,8,32], index: 0, kind: input, shape index: {}, may-alias: {0,1}]   ;;  %s2029_s1 = inlined_call_operand.vmem [shape: f32[2,8,32], index: 1, kind: input, shape index: {}, may-alias: {0,1}]   ;;  %s2030_s2 = inlined_call_operand.vmem [shape: f32[32,64], index: 2, kind: input, shape index: {}]   ;;  %s2031_s3 = inlined_call_operand.vmem [shape: f32[1,64], index: 3, kind: input, shape index: {}]   ;;  %s2032_s4 = inlined_call_operand.vmem [shape: f32[32,64], index: 4, kind: input, shape index: {}]   ;;  %s2033_s5 = inlined_call_operand.vmem [shape: f32[1,64], index: 5, kind: input, shape index: {}]   ;;  %s2034_s6 = inlined_call_operand.vmem [shape: f32[32,32], index: 6, kind: input, shape index: {}]   ;;  %s2035_s7 = inlined_call_operand.vmem [shape: f32[1,32], index: 7, kind: input, shape index: {}]   ;;  %s2036_s8 = inlined_call_operand.vmem [shape: f32[2,8,8], index: 8, kind: input, shape index: {}]   ;;  %s2037_s9 = inlined_call_operand.vmem [shape: f32[2,8,32], index: 9, kind: output, shape index: {}]  }
   0x1 LB: > { %s1597_s10 = sadd.s32 4294967295, %s1797_s30   ;;  %p1601_p0 = scmp.ge.s32.totalorder %s1797_s30, 1  ;;  %s1797_s30 = sphi %s1859_s30, %s19_s30  }
   0x2   : > { %p304_p1 = scmp.lt.s32.totalorder %s1797_s30, 3 }
   0x4   : > { %p305_p2 = pnand %p1601_p0, %p304_p1 }
   0x5   : > { %v450_v0 = vld [vmem:[%s2032_s4] sm:$0xff] (!%p305_p2)  ;;  %v451_v1 = vld [vmem:[%s2032_s4 + $0x8] sm:$0xff] (!%p305_p2)  ;;  %v1799_v3 = vmov (!%p305_p2), 0.0|0.0   ;;  %v452_v6 = vld [vmem:[%s2032_s4 + $0x10] sm:$0xff] (!%p305_p2)  ;;  %p346_p3 = scmp.lt.s32.totalorder (!%p305_p2), %s1597_s10, 1  ;;  %vm1800_vm0 = vmmov (!%p305_p2), 0  }
   0x6   : > { %308 = sbr.rel (%p305_p2) target bundleno = 2593 (0xa21), region = 56  ;;  %v365_v2 = vld [vmem:[%s2030_s2] sm:$0xff] (!%p305_p2)  ;;  %1751 = vmatprep.subr.bf16.mxu1 (!%p305_p2), %v1799_v3  ;;  %v1752_v4 = vpack.c.bf16 (!%p305_p2), %v451_v1, %v450_v0  ;;  %1745 = vmatprep.subr.bf16.mxu0 (!%p305_p2), %v1799_v3  ;;  %v366_v5 = vld [vmem:[%s2030_s2 + $0x8] sm:$0xff] (!%p305_p2)  ;;  %v453_v7 = vld [vmem:[%s2032_s4 + $0x18] sm:$0xff] (!%p305_p2)  ;;  %v1801_v9 = vmov (!%p305_p2), 0.0   ;;  %vm376_vm1 = vcmask (!%p305_p2), 261120  }
   0x7   : > { %v1746_v8 = vpack.c.bf16 (!%p305_p2), %v366_v5, %v365_v2  ;;  %1682 = vmatprep.mubr.msk.f32.mxu1 (!%p305_p2), %vm1800_vm0, %v1801_v9  ;;  %v367_v10 = vld [vmem:[%s2030_s2 + $0x10] sm:$0xff] (!%p305_p2)  ;;  %v368_v11 = vld [vmem:[%s2030_s2 + $0x18] sm:$0xff] (!%p305_p2)  ;;  %1671 = vmatprep.mubr.msk.f32.mxu0 (!%p305_p2), %vm1800_vm0, %v1801_v9  ;;  %v1755_v12 = vpack.c.bf16 (!%p305_p2), %v453_v7, %v452_v6  ;;  %v1608_v16 = vld [vmem:[%s2033_s5] ss:$0 sm:$0xff] (!%p305_p2)  ;;  %vm538_vm2 = vcmask (!%p305_p2), 64512   ;;  %s1802_s18 = smov (!%p305_p2), 120  }
   0x8   : > { %1753 = vmatpush3.bf16.msra.mxu1 (!%p305_p2), %v1752_v4  ;;  %v1749_v13 = vpack.c.bf16 (!%p305_p2), %v368_v11, %v367_v10  ;;  %v1606_v17 = vld [vmem:[%s2031_s3] ss:$0 sm:$0xff] (!%p305_p2)  ;;  %s1803_s22 = smov (!%p305_p2), 96   ;;  %s1804_s23 = smov (!%p305_p2), 112   ;;  %v535_v51 = vld [vmem:[%s2034_s6 + $0x8] sm:$0xff] (!%p305_p2) }
   0x9   : > { %1747 = vmatpush3.bf16.msra.mxu0 (!%p305_p2), %v1746_v8  ;;  %1754 = vmatprep.subr.bf16.mxu1 (!%p305_p2), %v1799_v3  ;;  %s1805_s24 = smov (!%p305_p2), 88   ;;  %v534_v7 = vld [vmem:[%s2034_s6] sm:$0xff] (!%p305_p2)  ;;  %s1807_s12 = smov (!%p305_p2), 80  }
   0xa   : > { %1748 = vmatprep.subr.bf16.mxu0 (!%p305_p2), %v1799_v3 }
   0xc   : > { %1756 = vmatpush3.bf16.msra.mxu1 (!%p305_p2), %v1755_v12 }
   0xd   : > { %s2039_s10 = smov (!%p346_p3, %s1597_s10), 1  ;;  %1750 = vmatpush3.bf16.msra.mxu0 %v1749_v13  ;;  %1690 = vmatprep.subr.mxu1 %v1801_v9 }
   0xe   : > { %s1895_s27 = sshll.u32 %s2039_s10, 3  ;;  %1685 = vmatprep.subr.mxu0 %v1801_v9  ;;  %s1808_s10 = smov 72  }
   0xf   : > { %s353_s11 = scalar_lea.vmem %s2029_s1, %s1895_s27  ;;  %s349_s14 = scalar_lea.vmem %s2028_s0, %s1895_s27 }
  0x10   : > { %v363_v14 = vld [vmem:[%s353_s11] sm:$0xff]  ;;  %s357_s21 = scalar_lea.vmem %s2036_s8, %s1895_s27  ;;  %s1806_s11 = smov 104  }
  0x11   : > { %v362_v15 = vld [vmem:[%s349_s14] sm:$0xff]  ;;  %1683 = vmatmul.mubr.msk.f32.vlgmr.msra.gmra.mrb[0].mxu1 %vm376_vm1, %v363_v14 }
  0x12   : > { %1672 = vmatmul.mubr.msk.f32.vlgmr.msra.gmra.mrb[0].mxu0 %vm376_vm1, %v362_v15  ;;  %1692 = vmatprep.mubr.msk.f32.mxu1 %vm1800_vm0, %v1801_v9  ;;  %v1941_v26 = vld [vmem:[%s357_s21] sm:$0xff]  ;;  %s361_s21 = scalar_lea.vmem %s2037_s9, %s1895_s27 }
  0x13   : > { %1687 = vmatprep.mubr.msk.f32.mxu0 %vm1800_vm0, %v1801_v9 }
  0xe4   : > { %v530_v18 = vpop.f32.mrb[0].mxu1 }
  0xe5   : > { %v1919_v19 = vadd.f32 %v1608_v16, %v530_v18  ;;  %v1684_v20 = vpop.f32.mrb[1].mxu1  ;;  %v446_v21 = vpop.f32.mrb[0].mxu0 }
  0xe6   : > { %v1921_v22 = vadd.f32 %v1606_v17, %v446_v21  ;;  %v1673_v23 = vpop.f32.mrb[1].mxu0 }
  0xe7   : > { %709 = vrot.lane.b32.xlu0 %v1919_v19, %s1802_s18  ;;  %1686 = vmatpush3.xpose.msk.msra.mxu0 %vm538_vm2, %v1919_v19 }
  0xe8   : > { %1695 = vmatprep.subr.mxu0 %v1801_v9 }
  0xea   : > { %1688 = vmatmul.mubr.msk.f32.vlgmr.msra.gmra.mrb[2].mxu0 %vm538_vm2, %v1921_v22 }
  0xeb   : > { %707 = vrot.lane.b32.xlu0 %v1921_v22, %s1802_s18  ;;  %1697 = vmatprep.mubr.msk.f32.mxu0 %vm1800_vm0, %v1801_v9 }
 0x159   : > { %v710_v24 = vpop.permute.xlu0 %709 }
 0x15a   : > { %1696 = vmatpush3.xpose.msk.msra.mxu0 %vm538_vm2, %v710_v24 }
 0x15b   : > { %1705 = vmatprep.subr.mxu0 %v1801_v9 }
 0x15d   : > { %v708_v25 = vpop.permute.xlu0 %707 }
 0x15e   : > { %1698 = vmatmul.mubr.msk.f32.vlgmr.msra.gmra.mrb[4].mxu0 %vm538_vm2, %v708_v25 }
 0x15f   : > { %1707 = vmatprep.mubr.msk.f32.mxu0 %vm1800_vm0, %v1801_v9  ;;  %1706 = vmatpush3.msra.mxu0 %v535_v51 }
 0x160   : > { %1715 = vmatprep.subr.mxu0 %v1801_v9 }
 0x1bd   : > { %v611_v27 = vpop.f32.mrb[2].mxu0 }
 0x1be   : > { %v612_v28 = vadd.f32 %v611_v27, %v1941_v26  ;;  %v1689_v29 = vpop.f32.mrb[3].mxu0 }
 0x1c0   : > { %v615_v30 = vmul.f32 0.0625, %v612_v28 }
 0x1c2   : > { %v616_v31 = vsel %vm538_vm2, %v615_v30, -inf }
 0x1c3   : > { %617 = vmax.xlane.f32.xlu1 %v616_v31 }
 0x231   : > { %v781_v32 = vpop.f32.mrb[4].mxu0 }
 0x232   : > { %v782_v33 = vadd.f32 %v781_v32, %v1941_v26  ;;  %v1699_v34 = vpop.f32.mrb[5].mxu0 }
 0x234   : > { %v785_v35 = vmul.f32 0.0625, %v782_v33 }
 0x236   : > { %v786_v36 = vsel %vm538_vm2, %v785_v35, -inf }
 0x237   : > { %787 = vmax.xlane.f32.xlu1 %v786_v36 }
 0x248   : > { %627 = vrot.lane.b32.xlu1 %v1919_v19, %s1803_s22 }
 0x250   : > { %v618_v37 = vpop.xlane.xlu1 %617 }
 0x251   : > { %v619_v38 = vsub.f32 %v615_v30, %v618_v37 }
 0x253   : > { %v620_v39 = vmul.f32 1.442695, %v619_v38 }
 0x255   : > { %1775 = vpow2.f32 %v620_v39 }
 0x25f   : > { %v1776_v40 = vpop.eup %1775 }
 0x260   : > { %v622_v41 = vsel %vm538_vm2, %v1776_v40, 0.0 }
 0x261   : > { %623 = vadd.xlane.f32.xlu0 %v622_v41 }
 0x277   : > { %1023 = vrot.lane.b32.xlu0 %v1921_v22, %s1804_s23 }
 0x2c4   : > { %v788_v42 = vpop.xlane.xlu1 %787 }
 0x2c5   : > { %v789_v43 = vsub.f32 %v785_v35, %v788_v42  ;;  %v536_v35 = vld [vmem:[%s2034_s6 + $0x10] sm:$0xff] }
 0x2c7   : > { %v790_v44 = vmul.f32 1.442695, %v789_v43 }
 0x2c8   : > { %v628_v45 = vpop.permute.xlu1 %627 }
 0x2c9   : > { %1777 = vpow2.f32 %v790_v44  ;;  %1691 = vmatpush3.msra.mxu1 %v628_v45 }
 0x2ca   : > { %1700 = vmatprep.subr.mxu1 %v1801_v9 }
 0x2d3   : > { %v1778_v46 = vpop.eup %1777 }
 0x2d4   : > { %v792_v47 = vsel %vm538_vm2, %v1778_v46, 0.0 }
 0x2d5   : > { %793 = vadd.xlane.f32.xlu1 %v792_v47 }
 0x2e6   : > { %797 = vrot.lane.b32.xlu1 %v1919_v19, %s1805_s24 }
 0x2ea   : > { %873 = vrot.lane.b32.xlu1 %v1921_v22, %s1805_s24 }
 0x2ee   : > { %v624_v48 = vpop.xlane.xlu0 %623  ;;  %1025 = vrot.lane.b32.xlu1 %v1919_v19, %s1804_s23 }
 0x2ef   : > { %1779 = vrcp.f32 %v624_v48 }
 0x2f2   : > { %v1024_v63 = vpop.permute.xlu0 %1023 }
 0x2f9   : > { %v1780_v49 = vpop.eup %1779 }
 0x2fa   : > { %v626_v50 = vmul.f32 %v1780_v49, %v1776_v40 }
 0x2fc   : > { %1693 = vmatmul.mubr.msk.f32.vlgmr.msra.gmra.mrb[2].mxu1 %vm538_vm2, %v626_v50 }
 0x2fd   : > { %1702 = vmatprep.mubr.msk.f32.mxu1 %vm1800_vm0, %v1801_v9 }
 0x362   : > { %v794_v52 = vpop.xlane.xlu1 %793 }
 0x363   : > { %1781 = vrcp.f32 %v794_v52  ;;  %v1626_v52 = vld [vmem:[%s2035_s7] ss:$0 sm:$0xff] }
 0x366   : > { %v798_v53 = vpop.permute.xlu1 %797 }
 0x367   : > { %1701 = vmatpush3.msra.mxu1 %v798_v53 }
 0x368   : > { %1710 = vmatprep.subr.mxu1 %v1801_v9 }
 0x36a   : > { %v874_v58 = vpop.permute.xlu1 %873 }
 0x36d   : > { %v1782_v54 = vpop.eup %1781 }
 0x36e   : > { %v796_v55 = vmul.f32 %v1782_v54, %v1778_v46  ;;  %v1026_v62 = vpop.permute.xlu1 %1025 }
 0x370   : > { %1703 = vmatmul.mubr.msk.f32.vlgmr.msra.gmra.mrb[4].mxu1 %vm538_vm2, %v796_v55 }
 0x371   : > { %1712 = vmatprep.mubr.msk.f32.mxu1 %vm1800_vm0, %v1801_v9  ;;  %1711 = vmatpush3.msra.mxu1 %v534_v7 }
 0x372   : > { %1720 = vmatprep.subr.mxu1 %v1801_v9 }
 0x3cf   : > { %v699_v56 = vpop.f32.mrb[2].mxu1 }
 0x3d0   : > { %v1694_v57 = vpop.f32.mrb[3].mxu1 }
 0x443   : > { %v869_v59 = vpop.f32.mrb[4].mxu1 }
 0x444   : > { %v876_v60 = vmul.f32 %v874_v58, %v869_v59  ;;  %v1704_v61 = vpop.f32.mrb[5].mxu1 }
 0x446   : > { %1708 = vmatmul.mubr.msk.f32.vlgmr.msra.gmra.mrb[6].mxu0 %vm538_vm2, %v876_v60 }
 0x447   : > { %1716 = vmatpush3.xpose.msk.msra.mxu0 %vm538_vm2, %v1026_v62  ;;  %1717 = vmatprep.mubr.msk.f32.mxu0 %vm1800_vm0, %v1801_v9 }
 0x448   : > { %1725 = vmatprep.subr.mxu0 %v1801_v9 }
 0x44a   : > { %1718 = vmatmul.mubr.msk.f32.vlgmr.msra.gmra.mrb[8].mxu0 %vm538_vm2, %v1024_v63 }
 0x44b   : > { %1727 = vmatprep.mubr.msk.f32.mxu0 %vm1800_vm0, %v1801_v9  ;;  %1726 = vmatpush3.msra.mxu0 %v536_v35 }
 0x44c   : > { %1735 = vmatprep.subr.mxu0 %v1801_v9 }
 0x519   : > { %v946_v0 = vpop.f32.mrb[6].mxu0 }
 0x51a   : > { %v1709_v1 = vpop.f32.mrb[7].mxu0 }
 0x51d   : > { %v1097_v2 = vpop.f32.mrb[8].mxu0 }
 0x51e   : > { %v1098_v3 = vadd.f32 %v1097_v2, %v1941_v26  ;;  %v1719_v4 = vpop.f32.mrb[9].mxu0 }
 0x520   : > { %v1101_v5 = vmul.f32 0.0625, %v1098_v3 }
 0x522   : > { %v1102_v6 = vsel %vm538_vm2, %v1101_v5, -inf }
 0x523   : > { %1103 = vmax.xlane.f32.xlu1 %v1102_v6 }
 0x534   : > { %703 = vrot.lane.b32.xlu1 %v1921_v22, %s1803_s22 }
 0x538   : > { %1269 = vrot.lane.b32.xlu1 %v1919_v19, %s1806_s11 }
 0x53c   : > { %1267 = vrot.lane.b32.xlu1 %v1921_v22, %s1806_s11 }
 0x5b0   : > { %v1104_v8 = vpop.xlane.xlu1 %1103 }
 0x5b1   : > { %v1105_v10 = vsub.f32 %v1101_v5, %v1104_v8 }
 0x5b3   : > { %v1106_v11 = vmul.f32 1.442695, %v1105_v10 }
 0x5b4   : > { %v704_v12 = vpop.permute.xlu1 %703 }
 0x5b5   : > { %1783 = vpow2.f32 %v1106_v11  ;;  %v706_v13 = vmul.f32 %v704_v12, %v699_v56 }
 0x5b7   : > { %1713 = vmatmul.mubr.msk.f32.vlgmr.msra.gmra.mrb[6].mxu1 %vm538_vm2, %v706_v13 }
 0x5b8   : > { %1722 = vmatprep.mubr.msk.f32.mxu1 %vm1800_vm0, %v1801_v9  ;;  %v1270_v20 = vpop.permute.xlu1 %1269 }
 0x5bc   : > { %v1268_v23 = vpop.permute.xlu1 %1267 }
 0x5bf   : > { %v1784_v14 = vpop.eup %1783 }
 0x5c0   : > { %v1108_v15 = vsel %vm538_vm2, %v1784_v14, 0.0 }
 0x5c1   : > { %1109 = vadd.xlane.f32.xlu0 %v1108_v15 }
 0x5d7   : > { %1113 = vrot.lane.b32.xlu0 %v1919_v19, %s1807_s12 }
 0x64e   : > { %v1110_v16 = vpop.xlane.xlu0 %1109 }
 0x64f   : > { %1785 = vrcp.f32 %v1110_v16 }
 0x652   : > { %v1114_v17 = vpop.permute.xlu0 %1113 }
 0x653   : > { %1721 = vmatpush3.msra.mxu1 %v1114_v17 }
 0x654   : > { %1730 = vmatprep.subr.mxu1 %v1801_v9 }
 0x659   : > { %v1786_v18 = vpop.eup %1785 }
 0x65a   : > { %v1112_v21 = vmul.f32 %v1786_v18, %v1784_v14 }
 0x65c   : > { %1723 = vmatmul.mubr.msk.f32.vlgmr.msra.gmra.mrb[8].mxu1 %vm538_vm2, %v1112_v21 }
 0x65d   : > { %1731 = vmatpush3.xpose.msk.msra.mxu1 %vm538_vm2, %v1270_v20  ;;  %1732 = vmatprep.mubr.msk.f32.mxu1 %vm1800_vm0, %v1801_v9 }
 0x65e   : > { %1740 = vmatprep.subr.mxu1 %v1801_v9 }
 0x660   : > { %1733 = vmatmul.mubr.msk.f32.vlgmr.msra.gmra.mrb[10].mxu1 %vm538_vm2, %v1268_v23 }
 0x661   : > { %1742 = vmatprep.mubr.msk.f32.mxu1 %vm1800_vm0, %v1801_v9 }
 0x68a   : > { %v1019_v24 = vpop.f32.mrb[6].mxu1 }
 0x68b   : > { %v1020_v25 = vadd.f32 %v1019_v24, %v946_v0  ;;  %v1714_v27 = vpop.f32.mrb[7].mxu1 }
 0x72f   : > { %v1185_v28 = vpop.f32.mrb[8].mxu1 }
 0x730   : > { %v1724_v29 = vpop.f32.mrb[9].mxu1 }
 0x733   : > { %v1341_v30 = vpop.f32.mrb[10].mxu1 }
 0x734   : > { %v1342_v31 = vadd.f32 %v1341_v30, %v1941_v26  ;;  %v1734_v32 = vpop.f32.mrb[11].mxu1 }
 0x736   : > { %v1345_v33 = vmul.f32 0.0625, %v1342_v31 }
 0x738   : > { %v1346_v34 = vsel %vm538_vm2, %v1345_v33, -inf }
 0x739   : > { %1347 = vmax.xlane.f32.xlu1 %v1346_v34 }
 0x74a   : > { %1189 = vrot.lane.b32.xlu1 %v1921_v22, %s1807_s12 }
 0x74e   : > { %1433 = vrot.lane.b32.xlu1 %v1921_v22, %s1808_s10  ;;  %v537_v22 = vld [vmem:[%s2034_s6 + $0x18] sm:$0xff] }
 0x74f   : > { %1741 = vmatpush3.msra.mxu1 %v537_v22 }
 0x7c6   : > { %v1348_v36 = vpop.xlane.xlu1 %1347 }
 0x7c7   : > { %v1349_v37 = vsub.f32 %v1345_v33, %v1348_v36 }
 0x7c9   : > { %v1350_v26 = vmul.f32 1.442695, %v1349_v37 }
 0x7ca   : > { %v1190_v38 = vpop.permute.xlu1 %1189 }
 0x7cb   : > { %1787 = vpow2.f32 %v1350_v26  ;;  %v1192_v39 = vmul.f32 %v1190_v38, %v1185_v28 }
 0x7cd   : > { %1728 = vmatmul.mubr.msk.f32.vlgmr.msra.gmra.mrb[10].mxu0 %vm538_vm2, %v1192_v39 }
 0x7ce   : > { %1737 = vmatprep.mubr.msk.f32.mxu0 %vm1800_vm0, %v1801_v9  ;;  %v1434_v48 = vpop.permute.xlu1 %1433 }
 0x7d5   : > { %v1788_v40 = vpop.eup %1787 }
 0x7d6   : > { %v1352_v41 = vsel %vm538_vm2, %v1788_v40, 0.0 }
 0x7d7   : > { %1353 = vadd.xlane.f32.xlu0 %v1352_v41 }
 0x7ed   : > { %1357 = vrot.lane.b32.xlu0 %v1919_v19, %s1808_s10 }
 0x864   : > { %v1354_v42 = vpop.xlane.xlu0 %1353 }
 0x865   : > { %1789 = vrcp.f32 %v1354_v42 }
 0x868   : > { %v1358_v43 = vpop.permute.xlu0 %1357 }
 0x869   : > { %1736 = vmatpush3.msra.mxu0 %v1358_v43 }
 0x86f   : > { %v1790_v44 = vpop.eup %1789 }
 0x870   : > { %v1356_v45 = vmul.f32 %v1790_v44, %v1788_v40 }
 0x872   : > { %1738 = vmatmul.mubr.msk.f32.vlgmr.msra.gmra.mrb[12].mxu0 %vm538_vm2, %v1356_v45 }
 0x8a0   : > { %v1262_v9 = vpop.f32.mrb[10].mxu0 }
 0x8a1   : > { %v1266_v46 = vadd.f32 %v1262_v9, %v1020_v25  ;;  %v1729_v47 = vpop.f32.mrb[11].mxu0 }
 0x945   : > { %v1429_v49 = vpop.f32.mrb[12].mxu0 }
 0x946   : > { %v1436_v19 = vmul.f32 %v1434_v48, %v1429_v49  ;;  %v1739_v50 = vpop.f32.mrb[13].mxu0 }
 0x948   : > { %1743 = vmatmul.mubr.msk.f32.vlgmr.msra.gmra.mrb[12].mxu1 %vm538_vm2, %v1436_v19 }
 0xa1b   : > { %v1506_v51 = vpop.f32.mrb[12].mxu1 }
 0xa1c   : > { %v1510_v53 = vadd.f32 %v1506_v51, %v1266_v46  ;;  %v1744_v54 = vpop.f32.mrb[13].mxu1 }
 0xa1e   : > { %v1518_v55 = vadd.f32 %v1626_v52, %v1510_v53 }
 0xa20   : > { %1519 = vst.msk [vmem:[%s361_s21] sm:$0xff] %vm376_vm1, %v1518_v55 }
 0xa21 PF: > { %s19_s30 = sadd.s32 1, %s1797_s30  }
 0xa22   : > { %p16_p4 = scmp.ge.s32.totalorder %s19_s30, 4  }
 0xa24   :  { %18 = sbr.rel (!%p16_p4) target bundleno = 1 (0x1), region = 92 }

</bundles_post_ra>
